<compile_context>
chip_gen: v7x
topology: tpu7x:2x2x1
jax: 0.10.0
libtpu: 0.0.40
codegen_flags: <defaults>
</compile_context>

<pallas_src>
import jax
import jax.numpy as jnp
from jax import lax
from jax.experimental import pallas as pl
from jax.experimental.pallas import tpu as pltpu


def _round_up(a, b):
    return -(-a // b) * b


def _padded_vmem_bytes(shape, dtype):
    """Rough VMEM footprint of an array, accounting for (sublane, lane) tile padding."""
    it = jnp.dtype(dtype).itemsize
    sub = {4: 8, 2: 16, 1: 32}[it]
    s = list(shape)
    if len(s) >= 2:
        s[-1] = _round_up(s[-1], 128)
        s[-2] = _round_up(s[-2], sub)
    elif len(s) == 1:
        s[-1] = _round_up(s[-1], 128)
    n = 1
    for d in s:
        n *= d
    return n * it


def res2net_stem_pallas(x, params):
    """x: (N, Cin, H, W) float32 (NCHW, like PyTorch). Returns (N, Cout, H//4, W//4)."""
    w1, b1, w2, b2, w3, b3 = params
    N, Cin, H, W = x.shape
    C1 = w1.shape[0]            # out_channels // 2
    C2 = w3.shape[0]            # out_channels
    H1 = (H - 1) // 2 + 1       # after conv1 (k=3, s=2, p=1)
    W1 = (W - 1) // 2 + 1
    H2 = (H1 - 1) // 2 + 1      # after maxpool (k=3, s=2, p=1)
    W2 = (W1 - 1) // 2 + 1
    HW = H1 * W1
    Wq = 2 * W2 - 1             # width of the W-stride-1 pooled strip the epilogue keeps
    Wv = 2 * W2 + 1             # padded-pool columns the epilogue reads
    WP = W1 + 9                 # halo-buffer width: cols 0..6 unused, 7 = left halo,
                                # 8..7+W1 interior (sublane-aligned), 8+W1 right halo
    HPP = 2 * H2 + 2            # pool-buffer height (>= H1+2, even -> free row pairing)

    # ---------------- wrapper glue (pure layout, no math) ----------------
    xn = jnp.transpose(x, (0, 2, 3, 1)).astype(jnp.float32)                  # NHWC
    xp = jnp.pad(xn, ((0, 0), (1, 2 * H1 - H), (1, 2 * W1 - W), (0, 0)))     # zero pad
    # conv1 im2col in the wrapper: minor dim = 9*Cin (tap-major, cin-minor), bf16.
    taps = []
    for kh in range(3):
        for kw in range(3):
            taps.append(xp[:, kh:kh + 2 * H1 - 1:2, kw:kw + 2 * W1 - 1:2, :])
    patches = jnp.concatenate(taps, axis=-1)                 # (N, H1, W1, 9*Cin)
    patches = patches.reshape(N, HW, 9 * Cin).astype(jnp.bfloat16)

    # weights as (tap*cin, cout) matrices (row order = (kh, kw, cin)), bf16 for the MXU
    w1m = jnp.transpose(w1, (2, 3, 1, 0)).reshape(9 * Cin, C1).astype(jnp.bfloat16)
    w2m = jnp.transpose(w2, (2, 3, 1, 0)).reshape(9 * C1, C1).astype(jnp.bfloat16)
    w3m = jnp.transpose(w3, (2, 3, 1, 0)).reshape(9 * C1, C2).astype(jnp.bfloat16)
    b1r = b1.reshape(1, C1).astype(jnp.float32)
    b2r = b2.reshape(1, C1).astype(jnp.float32)
    b3r = b3.reshape(1, C2).astype(jnp.float32)

    # tiny (W2, 2*W2-1) 0/1 column-select matrix: picks even columns of the W-pooled strip.
    # (0/1 x f32 on the MXU is exact, so pooling stays exact.)
    selT = (jnp.arange(Wq)[None, :] == 2 * jnp.arange(W2)[:, None]).astype(jnp.float32)

    def kernel(p1_ref, w1_ref, b1_ref, w2_ref, b2_ref, w3_ref, b3_ref, sel_ref,
               o_ref, col2, pfeat, ppool):
        # ---- conv1 (3x3, s2, p1): wrapper-built bf16 im2col, one matmul
        y = jnp.dot(p1_ref[0], w1_ref[...],
                    preferred_element_type=jnp.float32) + b1_ref[...]

        # ---- zero halo for the stride-1 convs (interior is fully overwritten below).
        # Re-done every step so there is NO cross-grid-iteration scratch state -> the
        # batch grid axis is safe to shard across cores ("parallel").
        pfeat[0:1, :, :] = jnp.zeros((1, WP, C1), jnp.float32)
        pfeat[H1 + 1:H1 + 2, :, :] = jnp.zeros((1, WP, C1), jnp.float32)
        pfeat[:, 7:8, :] = jnp.zeros((H1 + 2, 1, C1), jnp.float32)
        pfeat[:, 8 + W1:9 + W1, :] = jnp.zeros((H1 + 2, 1, C1), jnp.float32)

        # ---- conv2 (3x3, s1, p1): wide-K (9*C1) bf16 im2col matmul.
        # Interior store is sublane-aligned (W offset 8).
        pfeat[1:H1 + 1, 8:8 + W1, :] = y.reshape(H1, W1, C1)
        for kh in range(3):
            for kw in range(3):
                t = kh * 3 + kw
                col2[:, t * C1:(t + 1) * C1] = (
                    pfeat[kh:kh + H1, 7 + kw:7 + kw + W1, :]
                    .reshape(HW, C1).astype(jnp.bfloat16))
        y = jnp.dot(col2[...], w2_ref[...],
                    preferred_element_type=jnp.float32) + b2_ref[...]

        # ---- conv3 (3x3, s1, p1): same scratches reused, halo is still zero
        pfeat[1:H1 + 1, 8:8 + W1, :] = y.reshape(H1, W1, C1)
        for kh in range(3):
            for kw in range(3):
                t = kh * 3 + kw
                col2[:, t * C1:(t + 1) * C1] = (
                    pfeat[kh:kh + H1, 7 + kw:7 + kw + W1, :]
                    .reshape(HW, C1).astype(jnp.bfloat16))
        y = jnp.dot(col2[...], w3_ref[...],
                    preferred_element_type=jnp.float32) + b3_ref[...]

        # ---- maxpool 3x3, s2, p1 on a -inf halo buffer.
        ppool[0:1, :, :] = jnp.full((1, WP, C2), -jnp.inf, jnp.float32)
        ppool[H1 + 1:HPP, :, :] = jnp.full((HPP - H1 - 1, WP, C2), -jnp.inf, jnp.float32)
        ppool[:, 7:8, :] = jnp.full((HPP, 1, C2), -jnp.inf, jnp.float32)
        ppool[:, 8 + W1:9 + W1, :] = jnp.full((HPP, 1, C2), -jnp.inf, jnp.float32)
        ppool[1:H1 + 1, 8:8 + W1, :] = y.reshape(H1, W1, C2)

        # Stride-2 H subsample: free regroup of the leading dim into (row pair, slot):
        # padded pool row 2i+kh -> pp4[i + (kh==2), kh & 1].
        pp = ppool[0:HPP, 7:7 + Wv, :]                 # (HPP, Wv, C2)
        pp4 = pp.reshape(H2 + 1, 2, Wv, C2)            # leading-dims-only reshape (free)
        mh = jnp.maximum(jnp.maximum(pp4[0:H2, 0], pp4[0:H2, 1]), pp4[1:H2 + 1, 0])
        # Stride-1 3-tap max along W, then even-column select per pooled row (tiny MXU op).
        q = jnp.maximum(jnp.maximum(mh[:, 0:Wq, :], mh[:, 1:Wq + 1, :]),
                        mh[:, 2:Wq + 2, :])            # (H2, Wq, C2)
        for i in range(H2):
            o_ref[0, i] = jnp.dot(sel_ref[...], q[i],
                                  preferred_element_type=jnp.float32)   # (W2, C2)

    grid_spec = pltpu.PrefetchScalarGridSpec(
        num_scalar_prefetch=0,
        grid=(N,),
        in_specs=[
            pl.BlockSpec((1, HW, 9 * Cin), lambda b: (b, 0, 0)),   # conv1 im2col (bf16)
            pl.BlockSpec((9 * Cin, C1), lambda b: (0, 0)),         # w1 (bf16)
            pl.BlockSpec((1, C1), lambda b: (0, 0)),               # b1
            pl.BlockSpec((9 * C1, C1), lambda b: (0, 0)),          # w2 (bf16)
            pl.BlockSpec((1, C1), lambda b: (0, 0)),               # b2
            pl.BlockSpec((9 * C1, C2), lambda b: (0, 0)),          # w3 (bf16)
            pl.BlockSpec((1, C2), lambda b: (0, 0)),               # b3
            pl.BlockSpec((W2, Wq), lambda b: (0, 0)),              # pool column select
        ],
        out_specs=pl.BlockSpec((1, H2, W2, C2), lambda b: (b, 0, 0, 0)),
        scratch_shapes=[
            pltpu.VMEM((HW, 9 * C1), jnp.bfloat16),        # conv2/conv3 im2col (shared, bf16)
            pltpu.VMEM((H1 + 2, WP, C1), jnp.float32),     # zero-halo feature (shared)
            pltpu.VMEM((HPP, WP, C2), jnp.float32),        # -inf-halo pool input
        ],
    )

    # Explicit scoped-VMEM budget: 2x (double-buffered) blocks + scratch, with headroom.
    blocks = [((1, HW, 9 * Cin), jnp.bfloat16), ((9 * Cin, C1), jnp.bfloat16),
              ((1, C1), jnp.float32), ((9 * C1, C1), jnp.bfloat16),
              ((1, C1), jnp.float32), ((9 * C1, C2), jnp.bfloat16),
              ((1, C2), jnp.float32), ((W2, Wq), jnp.float32),
              ((1, H2, W2, C2), jnp.float32)]
    scratches = [((HW, 9 * C1), jnp.bfloat16), ((H1 + 2, WP, C1), jnp.float32),
                 ((HPP, WP, C2), jnp.float32)]
    est = (2 * sum(_padded_vmem_bytes(s, d) for s, d in blocks)
           + sum(_padded_vmem_bytes(s, d) for s, d in scratches))
    vmem_limit = int(min(96 * 2**20, max(32 * 2**20, 3 * est)))

    out = pl.pallas_call(
        kernel,
        out_shape=jax.ShapeDtypeStruct((N, H2, W2, C2), jnp.float32),
        grid_spec=grid_spec,
        compiler_params=pltpu.CompilerParams(
            dimension_semantics=("parallel",),
            vmem_limit_bytes=vmem_limit),
    )(patches, w1m, b1r, w2m, b2r, w3m, b3r, selT)

    return jnp.transpose(out, (0, 3, 1, 2))            # NHWC-pooled -> NCHW


def ref_forward(x, params):
    """Pure-JAX reference matching the PyTorch module semantics (NCHW, f32)."""
    w1, b1, w2, b2, w3, b3 = params
    dn = ("NCHW", "OIHW", "NCHW")
    y = lax.conv_general_dilated(x, w1, (2, 2), ((1, 1), (1, 1)),
                                 dimension_numbers=dn) + b1[None, :, None, None]
    y = lax.conv_general_dilated(y, w2, (1, 1), ((1, 1), (1, 1)),
                                 dimension_numbers=dn) + b2[None, :, None, None]
    y = lax.conv_general_dilated(y, w3, (1, 1), ((1, 1), (1, 1)),
                                 dimension_numbers=dn) + b3[None, :, None, None]
    y = lax.reduce_window(y, -jnp.inf, lax.max, (1, 1, 3, 3), (1, 1, 2, 2),
                          ((0, 0), (0, 0), (1, 1), (1, 1)))
    return y


if __name__ == "__main__":
    key = jax.random.PRNGKey(0)
    N, Cin, H, W = 2, 4, 16, 16
    Cout = 32
    C1 = Cout // 2
    ks = jax.random.split(key, 7)

    x = jax.random.normal(ks[0], (N, Cin, H, W), jnp.float32)
    w1 = jax.random.normal(ks[1], (C1, Cin, 3, 3), jnp.float32) / jnp.sqrt(Cin * 9.0)
    b1 = jax.random.normal(ks[2], (C1,), jnp.float32) * 0.1
    w2 = jax.random.normal(ks[3], (C1, C1, 3, 3), jnp.float32) / jnp.sqrt(C1 * 9.0)
    b2 = jax.random.normal(ks[4], (C1,), jnp.float32) * 0.1
    w3 = jax.random.normal(ks[5], (Cout, C1, 3, 3), jnp.float32) / jnp.sqrt(C1 * 9.0)
    b3 = jax.random.normal(ks[6], (Cout,), jnp.float32) * 0.1
    params = (w1, b1, w2, b2, w3, b3)

    out = res2net_stem_pallas(x, params)
    out = jax.block_until_ready(out)

    ref = ref_forward(x, params)
    assert out.shape == ref.shape == (N, Cout, H // 4, W // 4), (out.shape, ref.shape)
    err = float(jnp.max(jnp.abs(out - ref)))
    assert err < 5e-2, f"max abs err too large: {err}"

    print("KERNEL_OK")
</pallas_src>

<mosaic_0001>
module attributes {stable_mosaic.version = 11 : i64} {
  func.func @kernel(%arg0: i32, %arg1: memref<1x64x36xbf16, #tpu.memory_space<vmem>>, %arg2: memref<36x16xbf16, #tpu.memory_space<vmem>>, %arg3: memref<1x16xf32, #tpu.memory_space<vmem>>, %arg4: memref<144x16xbf16, #tpu.memory_space<vmem>>, %arg5: memref<1x16xf32, #tpu.memory_space<vmem>>, %arg6: memref<144x32xbf16, #tpu.memory_space<vmem>>, %arg7: memref<1x32xf32, #tpu.memory_space<vmem>>, %arg8: memref<4x7xf32, #tpu.memory_space<vmem>>, %arg9: memref<1x4x4x32xf32, #tpu.memory_space<vmem>>, %arg10: memref<64x144xbf16, #tpu.memory_space<vmem>>, %arg11: memref<10x17x16xf32, #tpu.memory_space<vmem>>, %arg12: memref<10x17x32xf32, #tpu.memory_space<vmem>>) attributes {dimension_semantics = [#tpu.dimension_semantics<parallel>], iteration_bounds = array<i64: 2>, scalar_prefetch = 0 : i64, scratch_operands = 3 : i64, tpu.core_type = #tpu.core_type<tc>, window_params = [{transform_indices = @transform_0, window_bounds = array<i64: 1, 64, 36>}, {pipeline_mode = #tpu.pipeline_mode<synchronous>, transform_indices = @transform_1, window_bounds = array<i64: 36, 16>}, {pipeline_mode = #tpu.pipeline_mode<synchronous>, transform_indices = @transform_2, window_bounds = array<i64: 1, 16>}, {pipeline_mode = #tpu.pipeline_mode<synchronous>, transform_indices = @transform_3, window_bounds = array<i64: 144, 16>}, {pipeline_mode = #tpu.pipeline_mode<synchronous>, transform_indices = @transform_4, window_bounds = array<i64: 1, 16>}, {pipeline_mode = #tpu.pipeline_mode<synchronous>, transform_indices = @transform_5, window_bounds = array<i64: 144, 32>}, {pipeline_mode = #tpu.pipeline_mode<synchronous>, transform_indices = @transform_6, window_bounds = array<i64: 1, 32>}, {pipeline_mode = #tpu.pipeline_mode<synchronous>, transform_indices = @transform_7, window_bounds = array<i64: 4, 7>}, {transform_indices = @transform_8, window_bounds = array<i64: 1, 4, 4, 32>}]} {
    %c0 = arith.constant 0 : index
    %c0_0 = arith.constant 0 : index
    %c0_1 = arith.constant 0 : index
    %0 = vector.load %arg1[%c0, %c0_0, %c0_1] : memref<1x64x36xbf16, #tpu.memory_space<vmem>>, vector<1x64x36xbf16>
    %1 = vector.shape_cast %0 : vector<1x64x36xbf16> to vector<64x36xbf16>
    %c0_2 = arith.constant 0 : index
    %c0_3 = arith.constant 0 : index
    %2 = vector.load %arg2[%c0_2, %c0_3] : memref<36x16xbf16, #tpu.memory_space<vmem>>, vector<36x16xbf16>
    %cst = arith.constant dense<0.000000e+00> : vector<64x16xf32>
    %3 = tpu.matmul %1, %2, %cst {dimension_numbers = #tpu.dot_dimension_numbers<[1], [0], [0], [1], [0, 0, 1, 1], [], []>} : vector<64x36xbf16>, vector<36x16xbf16>, vector<64x16xf32> -> vector<64x16xf32>
    %c0_4 = arith.constant 0 : index
    %c0_5 = arith.constant 0 : index
    %4 = vector.load %arg3[%c0_4, %c0_5] : memref<1x16xf32, #tpu.memory_space<vmem>>, vector<1x16xf32>
    %5 = vector.broadcast %4 : vector<1x16xf32> to vector<64x16xf32>
    %6 = arith.addf %3, %5 : vector<64x16xf32>
    %cst_6 = arith.constant 0.000000e+00 : f32
    %7 = vector.broadcast %cst_6 : f32 to vector<1x17x16xf32>
    %c0_7 = arith.constant 0 : index
    %c0_8 = arith.constant 0 : index
    %c0_9 = arith.constant 0 : index
    %8 = vector.load %arg11[%c0_7, %c0_8, %c0_9] : memref<10x17x16xf32, #tpu.memory_space<vmem>>, vector<1x17x16xf32>
    tpu.vector_store %arg11[%c0_7, %c0_8, %c0_9], %7 {strides = array<i32>} : memref<10x17x16xf32, #tpu.memory_space<vmem>>, vector<1x17x16xf32>,
    %cst_10 = arith.constant 0.000000e+00 : f32
    %9 = vector.broadcast %cst_10 : f32 to vector<1x17x16xf32>
    %c9 = arith.constant 9 : index
    %c0_11 = arith.constant 0 : index
    %c0_12 = arith.constant 0 : index
    %10 = vector.load %arg11[%c9, %c0_11, %c0_12] : memref<10x17x16xf32, #tpu.memory_space<vmem>>, vector<1x17x16xf32>
    tpu.vector_store %arg11[%c9, %c0_11, %c0_12], %9 {strides = array<i32>} : memref<10x17x16xf32, #tpu.memory_space<vmem>>, vector<1x17x16xf32>,
    %cst_13 = arith.constant 0.000000e+00 : f32
    %11 = vector.broadcast %cst_13 : f32 to vector<10x1x16xf32>
    %c0_14 = arith.constant 0 : index
    %c7 = arith.constant 7 : index
    %c0_15 = arith.constant 0 : index
    %12 = vector.load %arg11[%c0_14, %c7, %c0_15] : memref<10x17x16xf32, #tpu.memory_space<vmem>>, vector<10x1x16xf32>
    tpu.vector_store %arg11[%c0_14, %c7, %c0_15], %11 {strides = array<i32>} : memref<10x17x16xf32, #tpu.memory_space<vmem>>, vector<10x1x16xf32>,
    %cst_16 = arith.constant 0.000000e+00 : f32
    %13 = vector.broadcast %cst_16 : f32 to vector<10x1x16xf32>
    %c0_17 = arith.constant 0 : index
    %c16 = arith.constant 16 : index
    %c0_18 = arith.constant 0 : index
    %14 = vector.load %arg11[%c0_17, %c16, %c0_18] : memref<10x17x16xf32, #tpu.memory_space<vmem>>, vector<10x1x16xf32>
    tpu.vector_store %arg11[%c0_17, %c16, %c0_18], %13 {strides = array<i32>} : memref<10x17x16xf32, #tpu.memory_space<vmem>>, vector<10x1x16xf32>,
    %15 = vector.shape_cast %6 : vector<64x16xf32> to vector<8x8x16xf32>
    %c1 = arith.constant 1 : index
    %c8 = arith.constant 8 : index
    %c0_19 = arith.constant 0 : index
    %16 = vector.load %arg11[%c1, %c8, %c0_19] : memref<10x17x16xf32, #tpu.memory_space<vmem>>, vector<8x8x16xf32>
    tpu.vector_store %arg11[%c1, %c8, %c0_19], %15 {strides = array<i32>} : memref<10x17x16xf32, #tpu.memory_space<vmem>>, vector<8x8x16xf32>,
    %c0_20 = arith.constant 0 : index
    %c7_21 = arith.constant 7 : index
    %c0_22 = arith.constant 0 : index
    %17 = vector.load %arg11[%c0_20, %c7_21, %c0_22] : memref<10x17x16xf32, #tpu.memory_space<vmem>>, vector<8x8x16xf32>
    %18 = vector.shape_cast %17 : vector<8x8x16xf32> to vector<64x16xf32>
    %19 = arith.truncf %18 : vector<64x16xf32> to vector<64x16xbf16>
    %c0_23 = arith.constant 0 : index
    %c0_24 = arith.constant 0 : index
    %20 = vector.load %arg10[%c0_23, %c0_24] : memref<64x144xbf16, #tpu.memory_space<vmem>>, vector<64x16xbf16>
    tpu.vector_store %arg10[%c0_23, %c0_24], %19 {strides = array<i32>} : memref<64x144xbf16, #tpu.memory_space<vmem>>, vector<64x16xbf16>,
    %c0_25 = arith.constant 0 : index
    %c8_26 = arith.constant 8 : index
    %c0_27 = arith.constant 0 : index
    %21 = vector.load %arg11[%c0_25, %c8_26, %c0_27] : memref<10x17x16xf32, #tpu.memory_space<vmem>>, vector<8x8x16xf32>
    %22 = vector.shape_cast %21 : vector<8x8x16xf32> to vector<64x16xf32>
    %23 = arith.truncf %22 : vector<64x16xf32> to vector<64x16xbf16>
    %c0_28 = arith.constant 0 : index
    %c16_29 = arith.constant 16 : index
    %24 = vector.load %arg10[%c0_28, %c16_29] : memref<64x144xbf16, #tpu.memory_space<vmem>>, vector<64x16xbf16>
    tpu.vector_store %arg10[%c0_28, %c16_29], %23 {strides = array<i32>} : memref<64x144xbf16, #tpu.memory_space<vmem>>, vector<64x16xbf16>,
    %c0_30 = arith.constant 0 : index
    %c9_31 = arith.constant 9 : index
    %c0_32 = arith.constant 0 : index
    %25 = vector.load %arg11[%c0_30, %c9_31, %c0_32] : memref<10x17x16xf32, #tpu.memory_space<vmem>>, vector<8x8x16xf32>
    %26 = vector.shape_cast %25 : vector<8x8x16xf32> to vector<64x16xf32>
    %27 = arith.truncf %26 : vector<64x16xf32> to vector<64x16xbf16>
    %c0_33 = arith.constant 0 : index
    %c32 = arith.constant 32 : index
    %28 = vector.load %arg10[%c0_33, %c32] : memref<64x144xbf16, #tpu.memory_space<vmem>>, vector<64x16xbf16>
    tpu.vector_store %arg10[%c0_33, %c32], %27 {strides = array<i32>} : memref<64x144xbf16, #tpu.memory_space<vmem>>, vector<64x16xbf16>,
    %c1_34 = arith.constant 1 : index
    %c7_35 = arith.constant 7 : index
    %c0_36 = arith.constant 0 : index
    %29 = vector.load %arg11[%c1_34, %c7_35, %c0_36] : memref<10x17x16xf32, #tpu.memory_space<vmem>>, vector<8x8x16xf32>
    %30 = vector.shape_cast %29 : vector<8x8x16xf32> to vector<64x16xf32>
    %31 = arith.truncf %30 : vector<64x16xf32> to vector<64x16xbf16>
    %c0_37 = arith.constant 0 : index
    %c48 = arith.constant 48 : index
    %32 = vector.load %arg10[%c0_37, %c48] : memref<64x144xbf16, #tpu.memory_space<vmem>>, vector<64x16xbf16>
    tpu.vector_store %arg10[%c0_37, %c48], %31 {strides = array<i32>} : memref<64x144xbf16, #tpu.memory_space<vmem>>, vector<64x16xbf16>,
    %c1_38 = arith.constant 1 : index
    %c8_39 = arith.constant 8 : index
    %c0_40 = arith.constant 0 : index
    %33 = vector.load %arg11[%c1_38, %c8_39, %c0_40] : memref<10x17x16xf32, #tpu.memory_space<vmem>>, vector<8x8x16xf32>
    %34 = vector.shape_cast %33 : vector<8x8x16xf32> to vector<64x16xf32>
    %35 = arith.truncf %34 : vector<64x16xf32> to vector<64x16xbf16>
    %c0_41 = arith.constant 0 : index
    %c64 = arith.constant 64 : index
    %36 = vector.load %arg10[%c0_41, %c64] : memref<64x144xbf16, #tpu.memory_space<vmem>>, vector<64x16xbf16>
    tpu.vector_store %arg10[%c0_41, %c64], %35 {strides = array<i32>} : memref<64x144xbf16, #tpu.memory_space<vmem>>, vector<64x16xbf16>,
    %c1_42 = arith.constant 1 : index
    %c9_43 = arith.constant 9 : index
    %c0_44 = arith.constant 0 : index
    %37 = vector.load %arg11[%c1_42, %c9_43, %c0_44] : memref<10x17x16xf32, #tpu.memory_space<vmem>>, vector<8x8x16xf32>
    %38 = vector.shape_cast %37 : vector<8x8x16xf32> to vector<64x16xf32>
    %39 = arith.truncf %38 : vector<64x16xf32> to vector<64x16xbf16>
    %c0_45 = arith.constant 0 : index
    %c80 = arith.constant 80 : index
    %40 = vector.load %arg10[%c0_45, %c80] : memref<64x144xbf16, #tpu.memory_space<vmem>>, vector<64x16xbf16>
    tpu.vector_store %arg10[%c0_45, %c80], %39 {strides = array<i32>} : memref<64x144xbf16, #tpu.memory_space<vmem>>, vector<64x16xbf16>,
    %c2 = arith.constant 2 : index
    %c7_46 = arith.constant 7 : index
    %c0_47 = arith.constant 0 : index
    %41 = vector.load %arg11[%c2, %c7_46, %c0_47] : memref<10x17x16xf32, #tpu.memory_space<vmem>>, vector<8x8x16xf32>
    %42 = vector.shape_cast %41 : vector<8x8x16xf32> to vector<64x16xf32>
    %43 = arith.truncf %42 : vector<64x16xf32> to vector<64x16xbf16>
    %c0_48 = arith.constant 0 : index
    %c96 = arith.constant 96 : index
    %44 = vector.load %arg10[%c0_48, %c96] : memref<64x144xbf16, #tpu.memory_space<vmem>>, vector<64x16xbf16>
    tpu.vector_store %arg10[%c0_48, %c96], %43 {strides = array<i32>} : memref<64x144xbf16, #tpu.memory_space<vmem>>, vector<64x16xbf16>,
    %c2_49 = arith.constant 2 : index
    %c8_50 = arith.constant 8 : index
    %c0_51 = arith.constant 0 : index
    %45 = vector.load %arg11[%c2_49, %c8_50, %c0_51] : memref<10x17x16xf32, #tpu.memory_space<vmem>>, vector<8x8x16xf32>
    %46 = vector.shape_cast %45 : vector<8x8x16xf32> to vector<64x16xf32>
    %47 = arith.truncf %46 : vector<64x16xf32> to vector<64x16xbf16>
    %c0_52 = arith.constant 0 : index
    %c112 = arith.constant 112 : index
    %48 = vector.load %arg10[%c0_52, %c112] : memref<64x144xbf16, #tpu.memory_space<vmem>>, vector<64x16xbf16>
    tpu.vector_store %arg10[%c0_52, %c112], %47 {strides = array<i32>} : memref<64x144xbf16, #tpu.memory_space<vmem>>, vector<64x16xbf16>,
    %c2_53 = arith.constant 2 : index
    %c9_54 = arith.constant 9 : index
    %c0_55 = arith.constant 0 : index
    %49 = vector.load %arg11[%c2_53, %c9_54, %c0_55] : memref<10x17x16xf32, #tpu.memory_space<vmem>>, vector<8x8x16xf32>
    %50 = vector.shape_cast %49 : vector<8x8x16xf32> to vector<64x16xf32>
    %51 = arith.truncf %50 : vector<64x16xf32> to vector<64x16xbf16>
    %c0_56 = arith.constant 0 : index
    %c128 = arith.constant 128 : index
    %52 = vector.load %arg10[%c0_56, %c128] : memref<64x144xbf16, #tpu.memory_space<vmem>>, vector<64x16xbf16>
    tpu.vector_store %arg10[%c0_56, %c128], %51 {strides = array<i32>} : memref<64x144xbf16, #tpu.memory_space<vmem>>, vector<64x16xbf16>,
    %c0_57 = arith.constant 0 : index
    %c0_58 = arith.constant 0 : index
    %53 = vector.load %arg10[%c0_57, %c0_58] : memref<64x144xbf16, #tpu.memory_space<vmem>>, vector<64x144xbf16>
    %c0_59 = arith.constant 0 : index
    %c0_60 = arith.constant 0 : index
    %54 = vector.load %arg4[%c0_59, %c0_60] : memref<144x16xbf16, #tpu.memory_space<vmem>>, vector<144x16xbf16>
    %cst_61 = arith.constant dense<0.000000e+00> : vector<64x16xf32>
    %55 = tpu.matmul %53, %54, %cst_61 {dimension_numbers = #tpu.dot_dimension_numbers<[1], [0], [0], [1], [0, 0, 1, 1], [], []>} : vector<64x144xbf16>, vector<144x16xbf16>, vector<64x16xf32> -> vector<64x16xf32>
    %c0_62 = arith.constant 0 : index
    %c0_63 = arith.constant 0 : index
    %56 = vector.load %arg5[%c0_62, %c0_63] : memref<1x16xf32, #tpu.memory_space<vmem>>, vector<1x16xf32>
    %57 = vector.broadcast %56 : vector<1x16xf32> to vector<64x16xf32>
    %58 = arith.addf %55, %57 : vector<64x16xf32>
    %59 = vector.shape_cast %58 : vector<64x16xf32> to vector<8x8x16xf32>
    %c1_64 = arith.constant 1 : index
    %c8_65 = arith.constant 8 : index
    %c0_66 = arith.constant 0 : index
    %60 = vector.load %arg11[%c1_64, %c8_65, %c0_66] : memref<10x17x16xf32, #tpu.memory_space<vmem>>, vector<8x8x16xf32>
    tpu.vector_store %arg11[%c1_64, %c8_65, %c0_66], %59 {strides = array<i32>} : memref<10x17x16xf32, #tpu.memory_space<vmem>>, vector<8x8x16xf32>,
    %c0_67 = arith.constant 0 : index
    %c7_68 = arith.constant 7 : index
    %c0_69 = arith.constant 0 : index
    %61 = vector.load %arg11[%c0_67, %c7_68, %c0_69] : memref<10x17x16xf32, #tpu.memory_space<vmem>>, vector<8x8x16xf32>
    %62 = vector.shape_cast %61 : vector<8x8x16xf32> to vector<64x16xf32>
    %63 = arith.truncf %62 : vector<64x16xf32> to vector<64x16xbf16>
    %c0_70 = arith.constant 0 : index
    %c0_71 = arith.constant 0 : index
    %64 = vector.load %arg10[%c0_70, %c0_71] : memref<64x144xbf16, #tpu.memory_space<vmem>>, vector<64x16xbf16>
    tpu.vector_store %arg10[%c0_70, %c0_71], %63 {strides = array<i32>} : memref<64x144xbf16, #tpu.memory_space<vmem>>, vector<64x16xbf16>,
    %c0_72 = arith.constant 0 : index
    %c8_73 = arith.constant 8 : index
    %c0_74 = arith.constant 0 : index
    %65 = vector.load %arg11[%c0_72, %c8_73, %c0_74] : memref<10x17x16xf32, #tpu.memory_space<vmem>>, vector<8x8x16xf32>
    %66 = vector.shape_cast %65 : vector<8x8x16xf32> to vector<64x16xf32>
    %67 = arith.truncf %66 : vector<64x16xf32> to vector<64x16xbf16>
    %c0_75 = arith.constant 0 : index
    %c16_76 = arith.constant 16 : index
    %68 = vector.load %arg10[%c0_75, %c16_76] : memref<64x144xbf16, #tpu.memory_space<vmem>>, vector<64x16xbf16>
    tpu.vector_store %arg10[%c0_75, %c16_76], %67 {strides = array<i32>} : memref<64x144xbf16, #tpu.memory_space<vmem>>, vector<64x16xbf16>,
    %c0_77 = arith.constant 0 : index
    %c9_78 = arith.constant 9 : index
    %c0_79 = arith.constant 0 : index
    %69 = vector.load %arg11[%c0_77, %c9_78, %c0_79] : memref<10x17x16xf32, #tpu.memory_space<vmem>>, vector<8x8x16xf32>
    %70 = vector.shape_cast %69 : vector<8x8x16xf32> to vector<64x16xf32>
    %71 = arith.truncf %70 : vector<64x16xf32> to vector<64x16xbf16>
    %c0_80 = arith.constant 0 : index
    %c32_81 = arith.constant 32 : index
    %72 = vector.load %arg10[%c0_80, %c32_81] : memref<64x144xbf16, #tpu.memory_space<vmem>>, vector<64x16xbf16>
    tpu.vector_store %arg10[%c0_80, %c32_81], %71 {strides = array<i32>} : memref<64x144xbf16, #tpu.memory_space<vmem>>, vector<64x16xbf16>,
    %c1_82 = arith.constant 1 : index
    %c7_83 = arith.constant 7 : index
    %c0_84 = arith.constant 0 : index
    %73 = vector.load %arg11[%c1_82, %c7_83, %c0_84] : memref<10x17x16xf32, #tpu.memory_space<vmem>>, vector<8x8x16xf32>
    %74 = vector.shape_cast %73 : vector<8x8x16xf32> to vector<64x16xf32>
    %75 = arith.truncf %74 : vector<64x16xf32> to vector<64x16xbf16>
    %c0_85 = arith.constant 0 : index
    %c48_86 = arith.constant 48 : index
    %76 = vector.load %arg10[%c0_85, %c48_86] : memref<64x144xbf16, #tpu.memory_space<vmem>>, vector<64x16xbf16>
    tpu.vector_store %arg10[%c0_85, %c48_86], %75 {strides = array<i32>} : memref<64x144xbf16, #tpu.memory_space<vmem>>, vector<64x16xbf16>,
    %c1_87 = arith.constant 1 : index
    %c8_88 = arith.constant 8 : index
    %c0_89 = arith.constant 0 : index
    %77 = vector.load %arg11[%c1_87, %c8_88, %c0_89] : memref<10x17x16xf32, #tpu.memory_space<vmem>>, vector<8x8x16xf32>
    %78 = vector.shape_cast %77 : vector<8x8x16xf32> to vector<64x16xf32>
    %79 = arith.truncf %78 : vector<64x16xf32> to vector<64x16xbf16>
    %c0_90 = arith.constant 0 : index
    %c64_91 = arith.constant 64 : index
    %80 = vector.load %arg10[%c0_90, %c64_91] : memref<64x144xbf16, #tpu.memory_space<vmem>>, vector<64x16xbf16>
    tpu.vector_store %arg10[%c0_90, %c64_91], %79 {strides = array<i32>} : memref<64x144xbf16, #tpu.memory_space<vmem>>, vector<64x16xbf16>,
    %c1_92 = arith.constant 1 : index
    %c9_93 = arith.constant 9 : index
    %c0_94 = arith.constant 0 : index
    %81 = vector.load %arg11[%c1_92, %c9_93, %c0_94] : memref<10x17x16xf32, #tpu.memory_space<vmem>>, vector<8x8x16xf32>
    %82 = vector.shape_cast %81 : vector<8x8x16xf32> to vector<64x16xf32>
    %83 = arith.truncf %82 : vector<64x16xf32> to vector<64x16xbf16>
    %c0_95 = arith.constant 0 : index
    %c80_96 = arith.constant 80 : index
    %84 = vector.load %arg10[%c0_95, %c80_96] : memref<64x144xbf16, #tpu.memory_space<vmem>>, vector<64x16xbf16>
    tpu.vector_store %arg10[%c0_95, %c80_96], %83 {strides = array<i32>} : memref<64x144xbf16, #tpu.memory_space<vmem>>, vector<64x16xbf16>,
    %c2_97 = arith.constant 2 : index
    %c7_98 = arith.constant 7 : index
    %c0_99 = arith.constant 0 : index
    %85 = vector.load %arg11[%c2_97, %c7_98, %c0_99] : memref<10x17x16xf32, #tpu.memory_space<vmem>>, vector<8x8x16xf32>
    %86 = vector.shape_cast %85 : vector<8x8x16xf32> to vector<64x16xf32>
    %87 = arith.truncf %86 : vector<64x16xf32> to vector<64x16xbf16>
    %c0_100 = arith.constant 0 : index
    %c96_101 = arith.constant 96 : index
    %88 = vector.load %arg10[%c0_100, %c96_101] : memref<64x144xbf16, #tpu.memory_space<vmem>>, vector<64x16xbf16>
    tpu.vector_store %arg10[%c0_100, %c96_101], %87 {strides = array<i32>} : memref<64x144xbf16, #tpu.memory_space<vmem>>, vector<64x16xbf16>,
    %c2_102 = arith.constant 2 : index
    %c8_103 = arith.constant 8 : index
    %c0_104 = arith.constant 0 : index
    %89 = vector.load %arg11[%c2_102, %c8_103, %c0_104] : memref<10x17x16xf32, #tpu.memory_space<vmem>>, vector<8x8x16xf32>
    %90 = vector.shape_cast %89 : vector<8x8x16xf32> to vector<64x16xf32>
    %91 = arith.truncf %90 : vector<64x16xf32> to vector<64x16xbf16>
    %c0_105 = arith.constant 0 : index
    %c112_106 = arith.constant 112 : index
    %92 = vector.load %arg10[%c0_105, %c112_106] : memref<64x144xbf16, #tpu.memory_space<vmem>>, vector<64x16xbf16>
    tpu.vector_store %arg10[%c0_105, %c112_106], %91 {strides = array<i32>} : memref<64x144xbf16, #tpu.memory_space<vmem>>, vector<64x16xbf16>,
    %c2_107 = arith.constant 2 : index
    %c9_108 = arith.constant 9 : index
    %c0_109 = arith.constant 0 : index
    %93 = vector.load %arg11[%c2_107, %c9_108, %c0_109] : memref<10x17x16xf32, #tpu.memory_space<vmem>>, vector<8x8x16xf32>
    %94 = vector.shape_cast %93 : vector<8x8x16xf32> to vector<64x16xf32>
    %95 = arith.truncf %94 : vector<64x16xf32> to vector<64x16xbf16>
    %c0_110 = arith.constant 0 : index
    %c128_111 = arith.constant 128 : index
    %96 = vector.load %arg10[%c0_110, %c128_111] : memref<64x144xbf16, #tpu.memory_space<vmem>>, vector<64x16xbf16>
    tpu.vector_store %arg10[%c0_110, %c128_111], %95 {strides = array<i32>} : memref<64x144xbf16, #tpu.memory_space<vmem>>, vector<64x16xbf16>,
    %c0_112 = arith.constant 0 : index
    %c0_113 = arith.constant 0 : index
    %97 = vector.load %arg10[%c0_112, %c0_113] : memref<64x144xbf16, #tpu.memory_space<vmem>>, vector<64x144xbf16>
    %c0_114 = arith.constant 0 : index
    %c0_115 = arith.constant 0 : index
    %98 = vector.load %arg6[%c0_114, %c0_115] : memref<144x32xbf16, #tpu.memory_space<vmem>>, vector<144x32xbf16>
    %cst_116 = arith.constant dense<0.000000e+00> : vector<64x32xf32>
    %99 = tpu.matmul %97, %98, %cst_116 {dimension_numbers = #tpu.dot_dimension_numbers<[1], [0], [0], [1], [0, 0, 1, 1], [], []>} : vector<64x144xbf16>, vector<144x32xbf16>, vector<64x32xf32> -> vector<64x32xf32>
    %c0_117 = arith.constant 0 : index
    %c0_118 = arith.constant 0 : index
    %100 = vector.load %arg7[%c0_117, %c0_118] : memref<1x32xf32, #tpu.memory_space<vmem>>, vector<1x32xf32>
    %101 = vector.broadcast %100 : vector<1x32xf32> to vector<64x32xf32>
    %102 = arith.addf %99, %101 : vector<64x32xf32>
    %cst_119 = arith.constant 0xFF800000 : f32
    %103 = vector.broadcast %cst_119 : f32 to vector<1x17x32xf32>
    %c0_120 = arith.constant 0 : index
    %c0_121 = arith.constant 0 : index
    %c0_122 = arith.constant 0 : index
    %104 = vector.load %arg12[%c0_120, %c0_121, %c0_122] : memref<10x17x32xf32, #tpu.memory_space<vmem>>, vector<1x17x32xf32>
    tpu.vector_store %arg12[%c0_120, %c0_121, %c0_122], %103 {strides = array<i32>} : memref<10x17x32xf32, #tpu.memory_space<vmem>>, vector<1x17x32xf32>,
    %cst_123 = arith.constant 0xFF800000 : f32
    %105 = vector.broadcast %cst_123 : f32 to vector<1x17x32xf32>
    %c9_124 = arith.constant 9 : index
    %c0_125 = arith.constant 0 : index
    %c0_126 = arith.constant 0 : index
    %106 = vector.load %arg12[%c9_124, %c0_125, %c0_126] : memref<10x17x32xf32, #tpu.memory_space<vmem>>, vector<1x17x32xf32>
    tpu.vector_store %arg12[%c9_124, %c0_125, %c0_126], %105 {strides = array<i32>} : memref<10x17x32xf32, #tpu.memory_space<vmem>>, vector<1x17x32xf32>,
    %cst_127 = arith.constant 0xFF800000 : f32
    %107 = vector.broadcast %cst_127 : f32 to vector<10x1x32xf32>
    %c0_128 = arith.constant 0 : index
    %c7_129 = arith.constant 7 : index
    %c0_130 = arith.constant 0 : index
    %108 = vector.load %arg12[%c0_128, %c7_129, %c0_130] : memref<10x17x32xf32, #tpu.memory_space<vmem>>, vector<10x1x32xf32>
    tpu.vector_store %arg12[%c0_128, %c7_129, %c0_130], %107 {strides = array<i32>} : memref<10x17x32xf32, #tpu.memory_space<vmem>>, vector<10x1x32xf32>,
    %cst_131 = arith.constant 0xFF800000 : f32
    %109 = vector.broadcast %cst_131 : f32 to vector<10x1x32xf32>
    %c0_132 = arith.constant 0 : index
    %c16_133 = arith.constant 16 : index
    %c0_134 = arith.constant 0 : index
    %110 = vector.load %arg12[%c0_132, %c16_133, %c0_134] : memref<10x17x32xf32, #tpu.memory_space<vmem>>, vector<10x1x32xf32>
    tpu.vector_store %arg12[%c0_132, %c16_133, %c0_134], %109 {strides = array<i32>} : memref<10x17x32xf32, #tpu.memory_space<vmem>>, vector<10x1x32xf32>,
    %111 = vector.shape_cast %102 : vector<64x32xf32> to vector<8x8x32xf32>
    %c1_135 = arith.constant 1 : index
    %c8_136 = arith.constant 8 : index
    %c0_137 = arith.constant 0 : index
    %112 = vector.load %arg12[%c1_135, %c8_136, %c0_137] : memref<10x17x32xf32, #tpu.memory_space<vmem>>, vector<8x8x32xf32>
    tpu.vector_store %arg12[%c1_135, %c8_136, %c0_137], %111 {strides = array<i32>} : memref<10x17x32xf32, #tpu.memory_space<vmem>>, vector<8x8x32xf32>,
    %c0_138 = arith.constant 0 : index
    %c7_139 = arith.constant 7 : index
    %c0_140 = arith.constant 0 : index
    %113 = vector.load %arg12[%c0_138, %c7_139, %c0_140] : memref<10x17x32xf32, #tpu.memory_space<vmem>>, vector<10x9x32xf32>
    %114 = vector.shape_cast %113 : vector<10x9x32xf32> to vector<5x2x9x32xf32>
    %115 = vector.extract_strided_slice %114 {offsets = [0, 0, 0, 0], sizes = [4, 1, 9, 32], strides = [1, 1, 1, 1]} : vector<5x2x9x32xf32> to vector<4x1x9x32xf32>
    %116 = vector.shape_cast %115 : vector<4x1x9x32xf32> to vector<4x9x32xf32>
    %117 = vector.extract_strided_slice %114 {offsets = [0, 1, 0, 0], sizes = [4, 1, 9, 32], strides = [1, 1, 1, 1]} : vector<5x2x9x32xf32> to vector<4x1x9x32xf32>
    %118 = vector.shape_cast %117 : vector<4x1x9x32xf32> to vector<4x9x32xf32>
    %119 = arith.maximumf %116, %118 : vector<4x9x32xf32>
    %120 = vector.extract_strided_slice %114 {offsets = [1, 0, 0, 0], sizes = [4, 1, 9, 32], strides = [1, 1, 1, 1]} : vector<5x2x9x32xf32> to vector<4x1x9x32xf32>
    %121 = vector.shape_cast %120 : vector<4x1x9x32xf32> to vector<4x9x32xf32>
    %122 = arith.maximumf %119, %121 : vector<4x9x32xf32>
    %123 = vector.extract_strided_slice %122 {offsets = [0, 0, 0], sizes = [4, 7, 32], strides = [1, 1, 1]} : vector<4x9x32xf32> to vector<4x7x32xf32>
    %124 = vector.extract_strided_slice %122 {offsets = [0, 1, 0], sizes = [4, 7, 32], strides = [1, 1, 1]} : vector<4x9x32xf32> to vector<4x7x32xf32>
    %125 = arith.maximumf %123, %124 : vector<4x7x32xf32>
    %126 = vector.extract_strided_slice %122 {offsets = [0, 2, 0], sizes = [4, 7, 32], strides = [1, 1, 1]} : vector<4x9x32xf32> to vector<4x7x32xf32>
    %127 = arith.maximumf %125, %126 : vector<4x7x32xf32>
    %c0_141 = arith.constant 0 : index
    %c0_142 = arith.constant 0 : index
    %128 = vector.load %arg8[%c0_141, %c0_142] : memref<4x7xf32, #tpu.memory_space<vmem>>, vector<4x7xf32>
    %129 = vector.extract_strided_slice %127 {offsets = [0, 0, 0], sizes = [1, 7, 32], strides = [1, 1, 1]} : vector<4x7x32xf32> to vector<1x7x32xf32>
    %130 = vector.shape_cast %129 : vector<1x7x32xf32> to vector<7x32xf32>
    %cst_143 = arith.constant dense<0.000000e+00> : vector<4x32xf32>
    %131 = tpu.matmul %128, %130, %cst_143 {dimension_numbers = #tpu.dot_dimension_numbers<[1], [0], [0], [1], [0, 0, 1, 1], [], []>} : vector<4x7xf32>, vector<7x32xf32>, vector<4x32xf32> -> vector<4x32xf32>
    %c0_144 = arith.constant 0 : index
    %c0_145 = arith.constant 0 : index
    %c0_146 = arith.constant 0 : index
    %c0_147 = arith.constant 0 : index
    %132 = vector.load %arg9[%c0_144, %c0_145, %c0_146, %c0_147] : memref<1x4x4x32xf32, #tpu.memory_space<vmem>>, vector<1x1x4x32xf32>
    %133 = vector.shape_cast %132 : vector<1x1x4x32xf32> to vector<4x32xf32>
    %134 = vector.shape_cast %131 : vector<4x32xf32> to vector<1x1x4x32xf32>
    tpu.vector_store %arg9[%c0_144, %c0_145, %c0_146, %c0_147], %134 {strides = array<i32>} : memref<1x4x4x32xf32, #tpu.memory_space<vmem>>, vector<1x1x4x32xf32>,
    %c0_148 = arith.constant 0 : index
    %c0_149 = arith.constant 0 : index
    %135 = vector.load %arg8[%c0_148, %c0_149] : memref<4x7xf32, #tpu.memory_space<vmem>>, vector<4x7xf32>
    %136 = vector.extract_strided_slice %127 {offsets = [1, 0, 0], sizes = [1, 7, 32], strides = [1, 1, 1]} : vector<4x7x32xf32> to vector<1x7x32xf32>
    %137 = vector.shape_cast %136 : vector<1x7x32xf32> to vector<7x32xf32>
    %cst_150 = arith.constant dense<0.000000e+00> : vector<4x32xf32>
    %138 = tpu.matmul %135, %137, %cst_150 {dimension_numbers = #tpu.dot_dimension_numbers<[1], [0], [0], [1], [0, 0, 1, 1], [], []>} : vector<4x7xf32>, vector<7x32xf32>, vector<4x32xf32> -> vector<4x32xf32>
    %c0_151 = arith.constant 0 : index
    %c1_152 = arith.constant 1 : index
    %c0_153 = arith.constant 0 : index
    %c0_154 = arith.constant 0 : index
    %139 = vector.load %arg9[%c0_151, %c1_152, %c0_153, %c0_154] : memref<1x4x4x32xf32, #tpu.memory_space<vmem>>, vector<1x1x4x32xf32>
    %140 = vector.shape_cast %139 : vector<1x1x4x32xf32> to vector<4x32xf32>
    %141 = vector.shape_cast %138 : vector<4x32xf32> to vector<1x1x4x32xf32>
    tpu.vector_store %arg9[%c0_151, %c1_152, %c0_153, %c0_154], %141 {strides = array<i32>} : memref<1x4x4x32xf32, #tpu.memory_space<vmem>>, vector<1x1x4x32xf32>,
    %c0_155 = arith.constant 0 : index
    %c0_156 = arith.constant 0 : index
    %142 = vector.load %arg8[%c0_155, %c0_156] : memref<4x7xf32, #tpu.memory_space<vmem>>, vector<4x7xf32>
    %143 = vector.extract_strided_slice %127 {offsets = [2, 0, 0], sizes = [1, 7, 32], strides = [1, 1, 1]} : vector<4x7x32xf32> to vector<1x7x32xf32>
    %144 = vector.shape_cast %143 : vector<1x7x32xf32> to vector<7x32xf32>
    %cst_157 = arith.constant dense<0.000000e+00> : vector<4x32xf32>
    %145 = tpu.matmul %142, %144, %cst_157 {dimension_numbers = #tpu.dot_dimension_numbers<[1], [0], [0], [1], [0, 0, 1, 1], [], []>} : vector<4x7xf32>, vector<7x32xf32>, vector<4x32xf32> -> vector<4x32xf32>
    %c0_158 = arith.constant 0 : index
    %c2_159 = arith.constant 2 : index
    %c0_160 = arith.constant 0 : index
    %c0_161 = arith.constant 0 : index
    %146 = vector.load %arg9[%c0_158, %c2_159, %c0_160, %c0_161] : memref<1x4x4x32xf32, #tpu.memory_space<vmem>>, vector<1x1x4x32xf32>
    %147 = vector.shape_cast %146 : vector<1x1x4x32xf32> to vector<4x32xf32>
    %148 = vector.shape_cast %145 : vector<4x32xf32> to vector<1x1x4x32xf32>
    tpu.vector_store %arg9[%c0_158, %c2_159, %c0_160, %c0_161], %148 {strides = array<i32>} : memref<1x4x4x32xf32, #tpu.memory_space<vmem>>, vector<1x1x4x32xf32>,
    %c0_162 = arith.constant 0 : index
    %c0_163 = arith.constant 0 : index
    %149 = vector.load %arg8[%c0_162, %c0_163] : memref<4x7xf32, #tpu.memory_space<vmem>>, vector<4x7xf32>
    %150 = vector.extract_strided_slice %127 {offsets = [3, 0, 0], sizes = [1, 7, 32], strides = [1, 1, 1]} : vector<4x7x32xf32> to vector<1x7x32xf32>
    %151 = vector.shape_cast %150 : vector<1x7x32xf32> to vector<7x32xf32>
    %cst_164 = arith.constant dense<0.000000e+00> : vector<4x32xf32>
    %152 = tpu.matmul %149, %151, %cst_164 {dimension_numbers = #tpu.dot_dimension_numbers<[1], [0], [0], [1], [0, 0, 1, 1], [], []>} : vector<4x7xf32>, vector<7x32xf32>, vector<4x32xf32> -> vector<4x32xf32>
    %c0_165 = arith.constant 0 : index
    %c3 = arith.constant 3 : index
    %c0_166 = arith.constant 0 : index
    %c0_167 = arith.constant 0 : index
    %153 = vector.load %arg9[%c0_165, %c3, %c0_166, %c0_167] : memref<1x4x4x32xf32, #tpu.memory_space<vmem>>, vector<1x1x4x32xf32>
    %154 = vector.shape_cast %153 : vector<1x1x4x32xf32> to vector<4x32xf32>
    %155 = vector.shape_cast %152 : vector<4x32xf32> to vector<1x1x4x32xf32>
    tpu.vector_store %arg9[%c0_165, %c3, %c0_166, %c0_167], %155 {strides = array<i32>} : memref<1x4x4x32xf32, #tpu.memory_space<vmem>>, vector<1x1x4x32xf32>,
    return
  }
  func.func @transform_0(%arg0: i32) -> (i32, i32, i32) {
    %c0_i32 = arith.constant 0 : i32
    %c0_i32_0 = arith.constant 0 : i32
    %c0_i32_1 = arith.constant 0 : i32
    return %arg0, %c0_i32, %c0_i32_0 : i32, i32, i32
  }
  func.func @transform_1(%arg0: i32) -> (i32, i32) {
    %c0_i32 = arith.constant 0 : i32
    %c0_i32_0 = arith.constant 0 : i32
    %c0_i32_1 = arith.constant 0 : i32
    return %c0_i32, %c0_i32_0 : i32, i32
  }
  func.func @transform_2(%arg0: i32) -> (i32, i32) {
    %c0_i32 = arith.constant 0 : i32
    %c0_i32_0 = arith.constant 0 : i32
    %c0_i32_1 = arith.constant 0 : i32
    return %c0_i32, %c0_i32_0 : i32, i32
  }
  func.func @transform_3(%arg0: i32) -> (i32, i32) {
    %c0_i32 = arith.constant 0 : i32
    %c0_i32_0 = arith.constant 0 : i32
    %c0_i32_1 = arith.constant 0 : i32
    return %c0_i32, %c0_i32_0 : i32, i32
  }
  func.func @transform_4(%arg0: i32) -> (i32, i32) {
    %c0_i32 = arith.constant 0 : i32
    %c0_i32_0 = arith.constant 0 : i32
    %c0_i32_1 = arith.constant 0 : i32
    return %c0_i32, %c0_i32_0 : i32, i32
  }
  func.func @transform_5(%arg0: i32) -> (i32, i32) {
    %c0_i32 = arith.constant 0 : i32
    %c0_i32_0 = arith.constant 0 : i32
    %c0_i32_1 = arith.constant 0 : i32
    return %c0_i32, %c0_i32_0 : i32, i32
  }
  func.func @transform_6(%arg0: i32) -> (i32, i32) {
    %c0_i32 = arith.constant 0 : i32
    %c0_i32_0 = arith.constant 0 : i32
    %c0_i32_1 = arith.constant 0 : i32
    return %c0_i32, %c0_i32_0 : i32, i32
  }
  func.func @transform_7(%arg0: i32) -> (i32, i32) {
    %c0_i32 = arith.constant 0 : i32
    %c0_i32_0 = arith.constant 0 : i32
    %c0_i32_1 = arith.constant 0 : i32
    return %c0_i32, %c0_i32_0 : i32, i32
  }
  func.func @transform_8(%arg0: i32) -> (i32, i32, i32, i32) {
    %c0_i32 = arith.constant 0 : i32
    %c0_i32_0 = arith.constant 0 : i32
    %c0_i32_1 = arith.constant 0 : i32
    %c0_i32_2 = arith.constant 0 : i32
    return %arg0, %c0_i32, %c0_i32_0, %c0_i32_1 : i32, i32, i32, i32
  }
}

</mosaic_0001>

<bundles_post_ra>
// kernel: tpu_custom_call.1
= control target key start
LH: loop header
LB: loop body
LE: loop exit
PB: predicated region body
PF: predicated region fallthrough
CT: control target
= control target key end

     0   :  { %13 = vsyncpa [#allocation6], 0  ;;  %s2661_s0 = inlined_call_operand.vmem [shape: bf16[2,64,36], index: 0, kind: input, shape index: {}]   ;;  %s2662_s1 = inlined_call_operand.vmem [shape: bf16[36,16], index: 1, kind: input, shape index: {}]   ;;  %s2663_s2 = inlined_call_operand.vmem [shape: f32[1,16], index: 2, kind: input, shape index: {}]   ;;  %s2664_s3 = inlined_call_operand.vmem [shape: bf16[144,16], index: 3, kind: input, shape index: {}]   ;;  %s2665_s4 = inlined_call_operand.vmem [shape: f32[1,16], index: 4, kind: input, shape index: {}]   ;;  %s2666_s5 = inlined_call_operand.vmem [shape: bf16[144,32], index: 5, kind: input, shape index: {}]   ;;  %s2667_s6 = inlined_call_operand.vmem [shape: f32[1,32], index: 6, kind: input, shape index: {}]   ;;  %s2668_s7 = inlined_call_operand.vmem [shape: f32[4,7], index: 7, kind: input, shape index: {}]   ;;  %s2669_s8 = inlined_call_operand.hbm [shape: f32[2,4,4,32], index: 8, kind: output, shape index: {}]  }
   0x1   :  { %15 = vsyncpa [#allocation6 + $0x1], 0  ;;  %s2156_s27 = smov 0   ;;  %s2158_s28 = smov 0  }
   0x2   :  { %s2160_s29 = smov 0   ;;  %s2162_s30 = smov 0  }
   0x3 LB: > { %s2177_s9 = sadd.s32 4294967295, %s2096_s30   ;;  %s1843_s10 = sadd.s32 4294967294, %s2096_s30   ;;  %s2096_s30 = sphi %s2162_s30, %s2681_s30   ;;  %s2092_s29 = sphi %s2160_s29, %s2680_s29   ;;  %s2088_s28 = sphi %s2158_s28, %s2679_s28   ;;  %s2084_s27 = sphi %s2156_s27, %s2678_s27  }
   0x4   : > { %s2181_s11 = sadd.s32 1, %s2096_s30   ;;  %s201_s12 = sadd.s32 1, %s2092_s29 }
   0x5   : > { %s198_s13 = ssub.s32 %s2096_s30, %s2181_s11  ;;  %p211_p0 = scmp.ne.s32.totalorder %s2092_s29, %s2088_s28 }
   0x6   : > { %p199_p1 = scmp.eq.s32.totalorder %s198_s13, 0  ;;  %p212_p2 = scmp.eq.s32.totalorder %s2177_s9, 1 }
   0x7   : > { %p217_p3 = scmp.ne.s32.totalorder %s2088_s28, %s2084_s27  ;;  %p218_p4 = scmp.eq.s32.totalorder %s1843_s10, 1 }
   0x8   : > { %s2192_s14 = scalar_select %p199_p1, %s2092_s29, %s201_s12  }
   0x9   : > { %p2194_p5 = por %p212_p2, %p211_p0  ;;  %p2198_p6 = por %p218_p4, %p217_p3 }
   0xa   : > { %p1846_p7 = scmp.ge.s32.totalorder %s2096_s30, 1  ;;  %p265_p8 = scmp.lt.s32.totalorder %s2096_s30, 3 }
   0xc   : > { %p266_p9 = pnand %p1846_p7, %p265_p8 }
   0xd   : > { %v2009_v0 = vld [vmem:[%s2662_s1] sm:$0xff] (!%p266_p9)   ;;  %v2010_v1 = vld [vmem:[%s2662_s1 + $0x8] sm:$0xff] (!%p266_p9)   ;;  %p299_p10 = scmp.lt.s32.totalorder (!%p266_p9), %s2177_s9, 1  ;;  %v2011_v2 = vld [vmem:[%s2662_s1 + $0x10] ss:$0 sps:$4 sm:$0x33] (!%p266_p9)  }
   0xe   : > { %269 = sbr.rel (%p266_p9) target bundleno = 1256 (0x4e8), region = 52  ;;  %1923 = vmatprep.subr.bf16.mxu0 (!%p266_p9), %v2009_v0  ;;  %vm373_vm0 = vcmask (!%p266_p9), 1041408   ;;  %vm360_vm1 = vcmask (!%p266_p9), 293888   ;;  %vm442_vm2 = vcmask (!%p266_p9), 130048   ;;  %vm445_vm3 = vcmask (!%p266_p9), 122880   ;;  %v2016_v9 = vld [vmem:[%s2664_s3] sm:$0xff] (!%p266_p9)  }
   0xf   : > { %1924 = vmatpush3.bf16.msra.mxu0 (!%p266_p9), %v2009_v0  ;;  %v375_v4 = vsel (!%p266_p9), %vm373_vm0, %v2011_v2, 0  ;;  %v2098_v8 = vmov (!%p266_p9), 0.0   ;;  %v2099_v10 = vmov (!%p266_p9), 0   ;;  %v2017_v11 = vld [vmem:[%s2664_s3 + $0x8] sm:$0xff] (!%p266_p9)   ;;  %v2018_v12 = vld [vmem:[%s2664_s3 + $0x10] sm:$0xff] (!%p266_p9)   ;;  %v2019_v17 = vld [vmem:[%s2664_s3 + $0x18] sm:$0xff] (!%p266_p9)  }
  0x10   : > { %1925 = vmatprep.subr.bf16.mxu0 (!%p266_p9), %v2010_v1  ;;  %464 = vst.msk [vmem:[#allocation3 + $0x58] sm:$0x1] (!%p266_p9), %vm445_vm3, %v2098_v8  ;;  %446 = vst.msk [vmem:[#allocation3 + $0x10] sm:$0x1] (!%p266_p9), %vm445_vm3, %v2098_v8  ;;  %843 = vmatprep.subr.bf16.mxu1 (!%p266_p9), %v2099_v10  ;;  %v1850_v13 = vld [vmem:[%s2663_s2] ss:$0 sm:$0xff] (!%p266_p9) }
  0x11   : > { %443 = vst.msk [vmem:[#allocation3] sm:$0xff] (!%p266_p9), %vm442_vm2, %v2098_v8  ;;  %444 = vst.msk [vmem:[#allocation3 + $0x8] sm:$0xff] (!%p266_p9), %vm442_vm2, %v2098_v8  ;;  %844 = vmatpush1.bf16.msra.mxu1 (!%p266_p9), %v2016_v9  ;;  %v2020_v23 = vld [vmem:[%s2664_s3 + $0x20] sm:$0xff] (!%p266_p9)   ;;  %v2021_v48 = vld [vmem:[%s2664_s3 + $0x28] sm:$0xff] (!%p266_p9)   ;;  %s2101_s17 = smov (!%p266_p9), 48   ;;  %s2102_s20 = smov (!%p266_p9), 32  }
  0x12   : > { %448 = vst.msk [vmem:[#allocation3 + $0xd8] sm:$0xff] (!%p266_p9), %vm442_vm2, %v2098_v8  ;;  %449 = vst.msk [vmem:[#allocation3 + $0xe0] sm:$0xff] (!%p266_p9), %vm442_vm2, %v2098_v8  ;;  %845 = vmatprep.subr.bf16.mxu1 (!%p266_p9), %v2099_v10  ;;  %v2022_v51 = vld [vmem:[%s2664_s3 + $0x30] sm:$0xff] (!%p266_p9)   ;;  %s2103_s21 = smov (!%p266_p9), 80   ;;  %s2104_s22 = smov (!%p266_p9), 64   ;;  %vm524_vm4 = vcmask (!%p266_p9), 261248  }
  0x13   : > { %1926 = vmatpush3.bf16.msra.mxu0 (!%p266_p9), %v2010_v1  ;;  %450 = vst.msk [vmem:[#allocation3 + $0xe8] sm:$0x1] (!%p266_p9), %vm445_vm3, %v2098_v8  ;;  %452 = vst.msk [vmem:[#allocation3 + $0x1f] sm:$0x1] (!%p266_p9), %vm445_vm3, %v2098_v8  ;;  %s2670_s12 = smov (!%p266_p9), 112   ;;  %s2672_s13 = smov (!%p266_p9), 96  }
  0x14   : > { %1957 = vmatprep.subr.msk.bf16.mxu0 (!%p266_p9), %vm373_vm0, %v2011_v2  ;;  %453 = vst.msk [vmem:[#allocation3 + $0x37] sm:$0x1] (!%p266_p9), %vm445_vm3, %v2098_v8  ;;  %454 = vst.msk [vmem:[#allocation3 + $0x4f] sm:$0x1] (!%p266_p9), %vm445_vm3, %v2098_v8  ;;  %vm557_vm5 = vcmask (!%p266_p9), 392448   ;;  %vm590_vm6 = vcmask (!%p266_p9), 523648  }
  0x15   : > { %s300_s23 = scalar_select %p299_p10, %s2177_s9, 1  ;;  %455 = vst.msk [vmem:[#allocation3 + $0x67] sm:$0x1] %vm445_vm3, %v2098_v8  ;;  %456 = vst.msk [vmem:[#allocation3 + $0x7f] sm:$0x1] %vm445_vm3, %v2098_v8  ;;  %846 = vmatpush1.bf16.msra.mxu1 %v2017_v11  ;;  %vm623_vm7 = vcmask 654848  }
  0x16   : > { %457 = vst.msk [vmem:[#allocation3 + $0x97] sm:$0x1] %vm445_vm3, %v2098_v8  ;;  %458 = vst.msk [vmem:[#allocation3 + $0xaf] sm:$0x1] %vm445_vm3, %v2098_v8  ;;  %847 = vmatprep.subr.bf16.mxu1 %v2099_v10  ;;  %vm656_vm8 = vcmask 786048   ;;  %vm690_vm9 = vcmask 917248  }
  0x17   : > { %s1906_s24 = sshll.u32 %s300_s23, 5  ;;  %1928 = vmatpush3.bf16.msra.mxu0 %v375_v4  ;;  %459 = vst.msk [vmem:[#allocation3 + $0xc7] sm:$0x1] %vm445_vm3, %v2098_v8  ;;  %462 = vst.msk [vmem:[#allocation3 + $0x28] sm:$0x1] %vm445_vm3, %v2098_v8  ;;  %vm723_vm10 = vcmask 1048448  }
  0x18   : > { %s303_s10 = scalar_lea.vmem %s2661_s0, %s1906_s24  ;;  %463 = vst.msk [vmem:[#allocation3 + $0x40] sm:$0x1] %vm445_vm3, %v2098_v8  ;;  %465 = vst.msk [vmem:[#allocation3 + $0x70] sm:$0x1] %vm445_vm3, %v2098_v8  ;;  %1271 = vmatprep.subr.bf16.mxu0 %v2099_v10  ;;  %v2299_v27 = vld [vmem:[#allocation3 + $0x8] sm:$0xff]  ;;  %vm1336_vm11 = vcmask 261120  }
  0x19   : > { %v2012_v3 = vld [vmem:[%s303_s10] sm:$0xff]   ;;  %v2013_v5 = vld [vmem:[%s303_s10 + $0x8] sm:$0xff]   ;;  %v2014_v6 = vld [vmem:[%s303_s10 + $0x10] sm:$0xff]   ;;  %466 = vst.msk [vmem:[#allocation3 + $0x88] sm:$0x1] %vm445_vm3, %v2098_v8  ;;  %848 = vmatpush1.bf16.msra.mxu1 %v2018_v12  ;;  %vm1339_vm12 = vcmask 253952  }
  0x1a   : > { %1929 = vmatprep.mubr.msk.bf16.mxu0 %vm360_vm1, %v2012_v3  ;;  %v2015_v7 = vld [vmem:[%s303_s10 + $0x18] sm:$0xff]   ;;  %467 = vst.msk [vmem:[#allocation3 + $0xa0] sm:$0x1] %vm445_vm3, %v2098_v8  ;;  %468 = vst.msk [vmem:[#allocation3 + $0xb8] sm:$0x1] %vm445_vm3, %v2098_v8  ;;  %849 = vmatprep.subr.bf16.mxu1 %v2099_v10  ;;  %s2100_s10 = smov 16  }
  0x1b   : > { %1930 = vmatmul.mubr.msk.bf16.vlgmr.msra.gmra.mrb[0].mxu0 %vm360_vm1, %v2013_v5  ;;  %469 = vst.msk [vmem:[#allocation3 + $0xd0] sm:$0x1] %vm445_vm3, %v2098_v8  ;;  %451 = vst.msk [vmem:[#allocation3 + $0x7] sm:$0x1] %vm445_vm3, %v2098_v8  ;;  %v2024_v12 = vld [vmem:[%s2664_s3 + $0x40] sm:$0xff]   ;;  %vm2108_vm13 = vmmov 0  }
  0x1c   : > { %1933 = vmatprep.mubr.msk.bf16.mxu0 %vm360_vm1, %v2014_v6  ;;  %460 = vst.msk [vmem:[#allocation3 + $0xdf] sm:$0x1] %vm445_vm3, %v2098_v8  ;;  %461 = vst.msk [vmem:[#allocation3 + $0x10] sm:$0x1] %vm445_vm3, %v2098_v8  ;;  %v2023_v6 = vld [vmem:[%s2664_s3 + $0x38] sm:$0xff]   ;;  %vm1428_vm14 = vcmask 1045504  }
  0x1d   : > { %470 = vst.msk [vmem:[#allocation3 + $0xe8] sm:$0x1] %vm445_vm3, %v2098_v8  ;;  %850 = vmatpush1.bf16.msra.mxu1 %v2019_v17  ;;  %vm1454_vm15 = vcmask 1046528   ;;  %vm1450_vm0 = vcmask 56320  }
  0x1e   : > { %851 = vmatprep.subr.bf16.mxu1 %v2099_v10 }
  0x21   : > { %852 = vmatpush1.bf16.msra.mxu1 %v2020_v23 }
  0x22   : > { %853 = vmatprep.subr.bf16.mxu1 %v2099_v10  ;;  %v2301_v28 = vld [vmem:[#allocation3 + $0x7] sm:$0xff] }
  0x23   : > { %1934 = vmatmul.mubr.msk.bf16.gmra.mrb[4].mxu0 %vm360_vm1, %v2015_v7  ;;  %v2306_v32 = vld [vmem:[#allocation3 + $0x9] sm:$0xff]  ;;  %vm1528_vm1 = vcmask 257024  }
  0x24   : > { %v735_v55 = vld [vmem:[#allocation3 + $0xe1] sm:$0xff] }
  0x25   : > { %854 = vmatpush1.bf16.msra.mxu1 %v2021_v48 }
  0x26   : > { %855 = vmatprep.subr.bf16.mxu1 %v2099_v10 }
  0x29   : > { %856 = vmatpush1.bf16.msra.mxu1 %v2022_v51 }
  0x2a   : > { %857 = vmatprep.subr.bf16.mxu1 %v2099_v10 }
  0x2d   : > { %858 = vmatpush1.bf16.msra.mxu1 %v2023_v6  ;;  %v2025_v6 = vld [vmem:[%s2666_s5] sm:$0xff]  }
  0x2e   : > { %859 = vmatprep.subr.bf16.mxu1 %v2099_v10  ;;  %1272 = vmatpush1.bf16.msra.mxu0 %v2025_v6 }
  0x2f   : > { %1273 = vmatprep.subr.bf16.mxu0 %v2099_v10 }
  0x31   : > { %860 = vmatpush1.bf16.msra.mxu1 %v2024_v12  ;;  %v2437_v12 = vld [vmem:[%s2665_s4] ss:$0 sm:$0xff] }
  0x32   : > { %1937 = vmatprep.subr.mxu1 %v2098_v8 }
  0xee   : > { %v1931_v14 = vpop.f32.mrb[0].mxu0 }
  0xef   : > { %v420_v15 = vadd.f32 %v1931_v14, %v1850_v13  ;;  %v411_v16 = vpop.f32.mrb[1].mxu0 }
  0xf0   : > { %v412_v18 = vadd.f32 %v1850_v13, %v411_v16  ;;  %v1932_v19 = vpop.f32.mrb[2].mxu0 }
  0xf1   : > { %474 = vst.msk [vmem:[#allocation3 + $0x50] sm:$0xff] %vm442_vm2, %v420_v15  ;;  %v423_v20 = vadd.f32 %v1932_v19, %v1850_v13  ;;  %v414_v21 = vpop.f32.mrb[3].mxu0 }
  0xf2   : > { %472 = vst.msk [vmem:[#allocation3 + $0x20] sm:$0xff] %vm442_vm2, %v412_v18  ;;  %v415_v22 = vadd.f32 %v1850_v13, %v414_v21 }
  0xf3   : > { %475 = vst.msk [vmem:[#allocation3 + $0x68] sm:$0xff] %vm442_vm2, %v423_v20 }
  0xf4   : > { %473 = vst.msk [vmem:[#allocation3 + $0x38] sm:$0xff] %vm442_vm2, %v415_v22 }
  0xf6   : > { %v1935_v24 = vpop.f32.mrb[4].mxu0 }
  0xf7   : > { %v436_v25 = vadd.f32 %v1935_v24, %v1850_v13  ;;  %v427_v26 = vpop.f32.mrb[5].mxu0 }
  0xf8   : > { %v428_v29 = vadd.f32 %v1850_v13, %v427_v26  ;;  %v1936_v30 = vpop.f32.mrb[6].mxu0  ;;  %v729_v36 = vld [vmem:[#allocation3 + $0x51] sm:$0xff] }
  0xf9   : > { %478 = vst.msk [vmem:[#allocation3 + $0xb0] sm:$0xff] %vm442_vm2, %v436_v25  ;;  %v2304_v31 = vld [vmem:[#allocation3 + $0x20] sm:$0xff]  ;;  %v439_v33 = vadd.f32 %v1936_v30, %v1850_v13  ;;  %v430_v35 = vpop.f32.mrb[7].mxu0  ;;  %v564_v38 = vld [vmem:[#allocation3 + $0x4f] sm:$0xff] }
  0xfa   : > { %v562_v34 = vld [vmem:[#allocation3 + $0x1f] sm:$0xff]  ;;  %476 = vst.msk [vmem:[#allocation3 + $0x80] sm:$0xff] %vm442_vm2, %v428_v29  ;;  %v504_v37 = vpack.c.bf16 %v2304_v31, %v2299_v27  ;;  %v565_v39 = vld [vmem:[#allocation3 + $0x67] sm:$0xff]  ;;  %v431_v40 = vadd.f32 %v1850_v13, %v430_v35  ;;  %v597_v54 = vld [vmem:[#allocation3 + $0x50] sm:$0xff] }
  0xfb   : > { %v488_v41 = vpack.c.bf16 %v562_v34, %v2301_v28  ;;  %v728_v42 = vld [vmem:[#allocation3 + $0x39] sm:$0xff]  ;;  %v571_v43 = vpack.c.bf16 %v565_v39, %v564_v38  ;;  %v530_v44 = vld [vmem:[#allocation3 + $0x21] sm:$0xff]  ;;  %479 = vst.msk [vmem:[#allocation3 + $0xc8] sm:$0xff] %vm442_vm2, %v439_v33  ;;  %v730_v46 = vld [vmem:[#allocation3 + $0x69] sm:$0xff] }
  0xfc   : > { %v563_v45 = vld [vmem:[#allocation3 + $0x37] sm:$0xff]  ;;  %512 = vrot.lane.b32.xlu0 %v504_v37, %s2100_s10  ;;  %477 = vst.msk [vmem:[#allocation3 + $0x98] sm:$0xff] %vm442_vm2, %v431_v40  ;;  %v736_v47 = vpack.c.bf16 %v729_v36, %v728_v42  ;;  %v537_v50 = vpack.c.bf16 %v530_v44, %v2306_v32  ;;  %v637_v52 = vpack.c.bf16 %v730_v46, %v729_v36  ;;  %v598_v53 = vld [vmem:[#allocation3 + $0x68] sm:$0xff]  ;;  %v2377_v30 = vld [vmem:[#allocation3 + $0xdf] sm:$0xff] }
  0xfd   : > { %492 = vst.msk [vmem:[#allocation2] sm:$0xff] %vm442_vm2, %v488_v41  ;;  %580 = vrot.lane.b32.xlu1 %v571_v43, %s2101_s17  ;;  %v670_v49 = vpack.c.bf16 %v564_v38, %v563_v45  ;;  %v604_v60 = vpack.c.bf16 %v598_v53, %v597_v54  ;;  %v570_v1 = vpack.c.bf16 %v563_v45, %v562_v34  ;;  %v596_v5 = vld [vmem:[#allocation3 + $0x38] sm:$0xff] }
  0xfe   : > { %740 = vst.msk [vmem:[#allocation2 + $0x8] sm:$0xff] %vm442_vm2, %v736_v47  ;;  %v636_v11 = vpack.c.bf16 %v728_v42, %v530_v44  ;;  %v603_v13 = vpack.c.bf16 %v596_v5, %v2304_v31  ;;  %v703_v14 = vpack.c.bf16 %v597_v54, %v596_v5  ;;  %v2380_v31 = vld [vmem:[#allocation3 + $0xe0] sm:$0xff] }
  0xff   : > { %493 = vst.msk [vmem:[#allocation2 + $0x10] sm:$0xff] %vm442_vm2, %v670_v49 }
 0x100   : > { %545 = vrot.lane.b32.xlu0 %v537_v50, %s2102_s20  ;;  %v2328_v56 = vld [vmem:[#allocation3 + $0xb1] sm:$0xff] }
 0x101   : > { %v2330_v57 = vld [vmem:[#allocation3 + $0x81] sm:$0xff]  ;;  %646 = vrot.lane.b32.xlu1 %v637_v52, %s2103_s21  ;;  %v568_v63 = vld [vmem:[#allocation3 + $0xaf] sm:$0xff] }
 0x102   : > { %v665_v58 = vld [vmem:[#allocation3 + $0x7f] sm:$0xff]  ;;  %v737_v59 = vpack.c.bf16 %v2330_v57, %v730_v46  ;;  %v2334_v61 = vld [vmem:[#allocation3 + $0xc9] sm:$0xff] }
 0x103   : > { %v671_v62 = vpack.c.bf16 %v665_v58, %v565_v39  ;;  %v739_v0 = vpack.c.bf16 %v735_v55, %v2334_v61  ;;  %v732_v2 = vld [vmem:[#allocation3 + $0x99] sm:$0xff]  ;;  %v601_v17 = vld [vmem:[#allocation3 + $0xb0] sm:$0xff]  ;;  %v602_v18 = vld [vmem:[#allocation3 + $0xc8] sm:$0xff]  ;;  %v639_v29 = vpack.c.bf16 %v2334_v61, %v2328_v56 }
 0x104   : > { %v567_v3 = vld [vmem:[#allocation3 + $0x97] sm:$0xff]  ;;  %741 = vst.msk [vmem:[#allocation2 + $0x18] sm:$0xff] %vm442_vm2, %v737_v59  ;;  %613 = vrot.lane.b32.xlu0 %v604_v60, %s2104_s22  ;;  %v738_v4 = vpack.c.bf16 %v2328_v56, %v732_v2  ;;  %v698_v15 = vld [vmem:[#allocation3 + $0x80] sm:$0xff]  ;;  %v606_v20 = vpack.c.bf16 %v602_v18, %v601_v17  ;;  %v638_v25 = vpack.c.bf16 %v732_v2, %v2330_v57 }
 0x105   : > { %494 = vst.msk [vmem:[#allocation2 + $0x20] sm:$0xff] %vm442_vm2, %v671_v62  ;;  %743 = vst.msk [vmem:[#allocation2 + $0x38] sm:$0xff] %vm442_vm2, %v739_v0  ;;  %578 = vrot.lane.b32.xlu1 %v570_v1, %s2101_s17  ;;  %v745_v7 = vld [vmem:[#allocation2 + $0x8] sm:$0xff]  ;;  %v672_v9 = vpack.c.bf16 %v568_v63, %v567_v3  ;;  %v704_v16 = vpack.c.bf16 %v698_v15, %v598_v53  ;;  %v600_v22 = vld [vmem:[#allocation3 + $0x98] sm:$0xff]  ;;  %v572_v23 = vpack.c.bf16 %v567_v3, %v665_v58 }
 0x106   : > { %742 = vst.msk [vmem:[#allocation2 + $0x28] sm:$0xff] %vm442_vm2, %v738_v4  ;;  %1872 = vmatprep.mubr.msk.bf16.mxu1 %vm442_vm2, %v745_v7  ;;  %v569_v19 = vld [vmem:[#allocation3 + $0xc7] sm:$0xff]  ;;  %v605_v24 = vpack.c.bf16 %v600_v22, %v698_v15  ;;  %v705_v26 = vpack.c.bf16 %v601_v17, %v600_v22  ;;  %v706_v34 = vpack.c.bf16 %v2380_v31, %v602_v18 }
 0x107   : > { %495 = vst.msk [vmem:[#allocation2 + $0x30] sm:$0xff] %vm442_vm2, %v672_v9  ;;  %v573_v21 = vpack.c.bf16 %v569_v19, %v568_v63  ;;  %v673_v33 = vpack.c.bf16 %v2377_v30, %v569_v19  ;;  %v2026_v7 = vld [vmem:[%s2666_s5 + $0x8] sm:$0xff]  }
 0x108   : > { %644 = vrot.lane.b32.xlu0 %v636_v11, %s2103_s21  ;;  %1274 = vmatpush1.bf16.msra.mxu0 %v2026_v7  ;;  %v2028_v11 = vld [vmem:[%s2666_s5 + $0x18] sm:$0xff]  }
 0x109   : > { %611 = vrot.lane.b32.xlu1 %v603_v13, %s2104_s22  ;;  %1275 = vmatprep.subr.bf16.mxu0 %v2099_v10 }
 0x10b   : > { %v747_v50 = vld [vmem:[#allocation2 + $0x18] sm:$0xff] }
 0x10c   : > { %711 = vrot.lane.b32.xlu0 %v703_v14, %s2670_s12 }
 0x10d   : > { %678 = vrot.lane.b32.xlu1 %v670_v49, %s2672_s13  ;;  %v749_v57 = vld [vmem:[#allocation2 + $0x28] sm:$0xff] }
 0x110   : > { %547 = vrot.lane.b32.xlu0 %v736_v47, %s2102_s20 }
 0x111   : > { %514 = vrot.lane.b32.xlu1 %v703_v14, %s2100_s10  ;;  %v2029_v14 = vld [vmem:[%s2666_s5 + $0x20] sm:$0xff]  }
 0x114   : > { %680 = vrot.lane.b32.xlu0 %v671_v62, %s2672_s13 }
 0x115   : > { %713 = vrot.lane.b32.xlu1 %v704_v16, %s2670_s12 }
 0x118   : > { %516 = vrot.lane.b32.xlu0 %v704_v16, %s2100_s10 }
 0x119   : > { %549 = vrot.lane.b32.xlu1 %v737_v59, %s2102_s20 }
 0x11c   : > { %617 = vrot.lane.b32.xlu0 %v606_v20, %s2104_s22  ;;  %v2030_v20 = vld [vmem:[%s2666_s5 + $0x28] sm:$0xff]  }
 0x11d   : > { %584 = vrot.lane.b32.xlu1 %v573_v21, %s2101_s17  ;;  %v2031_v21 = vld [vmem:[%s2666_s5 + $0x30] sm:$0xff]  }
 0x120   : > { %582 = vrot.lane.b32.xlu0 %v572_v23, %s2101_s17 }
 0x121   : > { %615 = vrot.lane.b32.xlu1 %v605_v24, %s2104_s22 }
 0x124   : > { %648 = vrot.lane.b32.xlu0 %v638_v25, %s2103_s21 }
 0x125   : > { %682 = vrot.lane.b32.xlu1 %v672_v9, %s2672_s13  ;;  %v2027_v9 = vld [vmem:[%s2666_s5 + $0x10] sm:$0xff]  }
 0x126   : > { %1276 = vmatpush1.bf16.msra.mxu0 %v2027_v9 }
 0x127   : > { %1277 = vmatprep.subr.bf16.mxu0 %v2099_v10 }
 0x128   : > { %715 = vrot.lane.b32.xlu0 %v705_v26, %s2670_s12 }
 0x129   : > { %518 = vrot.lane.b32.xlu1 %v705_v26, %s2100_s10 }
 0x12a   : > { %1278 = vmatpush1.bf16.msra.mxu0 %v2028_v11 }
 0x12b   : > { %1279 = vmatprep.subr.bf16.mxu0 %v2099_v10 }
 0x12c   : > { %551 = vrot.lane.b32.xlu0 %v738_v4, %s2102_s20  ;;  %v751_v4 = vld [vmem:[#allocation2 + $0x38] sm:$0xff] }
 0x12d   : > { %650 = vrot.lane.b32.xlu1 %v639_v29, %s2103_s21 }
 0x12e   : > { %1280 = vmatpush1.bf16.msra.mxu0 %v2029_v14 }
 0x12f   : > { %1281 = vmatprep.subr.bf16.mxu0 %v2099_v10 }
 0x130   : > { %684 = vrot.lane.b32.xlu0 %v673_v33, %s2672_s13  ;;  %s2677_s13 = smov 112  }
 0x131   : > { %717 = vrot.lane.b32.xlu1 %v706_v34, %s2670_s12  ;;  %s2676_s12 = smov 96  }
 0x132   : > { %1282 = vmatpush1.bf16.msra.mxu0 %v2030_v20 }
 0x133   : > { %1283 = vmatprep.subr.bf16.mxu0 %v2099_v10 }
 0x136   : > { %1284 = vmatpush1.bf16.msra.mxu0 %v2031_v21  ;;  %v1163_v21 = vld [vmem:[#allocation3 + $0xe1] sm:$0xff] }
 0x137   : > { %1285 = vmatprep.subr.bf16.mxu0 %v2099_v10 }
 0x16e   : > { %v513_v35 = vpop.permute.xlu0 %512 }
 0x16f   : > { %525 = vst.msk [vmem:[#allocation2] sm:$0xff] %vm524_vm4, %v513_v35  ;;  %v581_v36 = vpop.permute.xlu1 %580 }
 0x172   : > { %v546_v37 = vpop.permute.xlu0 %545 }
 0x173   : > { %558 = vst.msk [vmem:[#allocation2] sm:$0xff] %vm557_vm5, %v546_v37  ;;  %v647_v38 = vpop.permute.xlu1 %646 }
 0x176   : > { %v614_v39 = vpop.permute.xlu0 %613 }
 0x177   : > { %v579_v40 = vpop.permute.xlu1 %578 }
 0x178   : > { %591 = vst.msk [vmem:[#allocation2] sm:$0xff] %vm590_vm6, %v579_v40 }
 0x17a   : > { %v645_v41 = vpop.permute.xlu0 %644 }
 0x17b   : > { %v612_v42 = vpop.permute.xlu1 %611 }
 0x17c   : > { %624 = vst.msk [vmem:[#allocation2] sm:$0xff] %vm623_vm7, %v612_v42  ;;  %v2033_v42 = vld [vmem:[%s2666_s5 + $0x40] sm:$0xff]  }
 0x17d   : > { %657 = vst.msk [vmem:[#allocation2] sm:$0xff] %vm656_vm8, %v645_v41 }
 0x17e   : > { %v712_v43 = vpop.permute.xlu0 %711 }
 0x17f   : > { %v679_v44 = vpop.permute.xlu1 %678 }
 0x180   : > { %691 = vst.msk [vmem:[#allocation2] sm:$0xff] %vm690_vm9, %v679_v44 }
 0x181   : > { %724 = vst.msk [vmem:[#allocation2] sm:$0xff] %vm723_vm10, %v712_v43 }
 0x182   : > { %v548_v45 = vpop.permute.xlu0 %547 }
 0x183   : > { %v515_v46 = vpop.permute.xlu1 %514 }
 0x184   : > { %526 = vst.msk [vmem:[#allocation2 + $0x10] sm:$0xff] %vm524_vm4, %v515_v46 }
 0x185   : > { %559 = vst.msk [vmem:[#allocation2 + $0x10] sm:$0xff] %vm557_vm5, %v548_v45 }
 0x186   : > { %592 = vst.msk [vmem:[#allocation2 + $0x10] sm:$0xff] %vm590_vm6, %v581_v36  ;;  %v681_v47 = vpop.permute.xlu0 %680 }
 0x187   : > { %625 = vst.msk [vmem:[#allocation2 + $0x10] sm:$0xff] %vm623_vm7, %v614_v39  ;;  %v714_v48 = vpop.permute.xlu1 %713 }
 0x188   : > { %658 = vst.msk [vmem:[#allocation2 + $0x10] sm:$0xff] %vm656_vm8, %v647_v38  ;;  %v744_v49 = vld [vmem:[#allocation2] sm:$0xff] }
 0x189   : > { %692 = vst.msk [vmem:[#allocation2 + $0x10] sm:$0xff] %vm690_vm9, %v681_v47  ;;  %876 = vmatmul.mubr.bf16.vlgmr.msra.gmra.mrb[0].mxu1 %v744_v49 }
 0x18a   : > { %725 = vst.msk [vmem:[#allocation2 + $0x10] sm:$0xff] %vm723_vm10, %v714_v48  ;;  %v517_v51 = vpop.permute.xlu0 %516  ;;  %1873 = vmatprep.mubr.msk.bf16.mxu1 %vm442_vm2, %v747_v50 }
 0x18b   : > { %527 = vst.msk [vmem:[#allocation2 + $0x20] sm:$0xff] %vm524_vm4, %v517_v51  ;;  %v550_v52 = vpop.permute.xlu1 %549 }
 0x18c   : > { %560 = vst.msk [vmem:[#allocation2 + $0x20] sm:$0xff] %vm557_vm5, %v550_v52 }
 0x18e   : > { %v618_v53 = vpop.permute.xlu0 %617 }
 0x18f   : > { %v585_v54 = vpop.permute.xlu1 %584 }
 0x191   : > { %v746_v55 = vld [vmem:[#allocation2 + $0x10] sm:$0xff] }
 0x192   : > { %v583_v56 = vpop.permute.xlu0 %582  ;;  %884 = vmatmul.mubr.bf16.gmra.mrb[4].mxu1 %v746_v55 }
 0x193   : > { %593 = vst.msk [vmem:[#allocation2 + $0x20] sm:$0xff] %vm590_vm6, %v583_v56  ;;  %v616_v58 = vpop.permute.xlu1 %615  ;;  %1874 = vmatprep.mubr.msk.bf16.mxu1 %vm442_vm2, %v749_v57 }
 0x194   : > { %626 = vst.msk [vmem:[#allocation2 + $0x20] sm:$0xff] %vm623_vm7, %v616_v58 }
 0x196   : > { %v649_v59 = vpop.permute.xlu0 %648 }
 0x197   : > { %659 = vst.msk [vmem:[#allocation2 + $0x20] sm:$0xff] %vm656_vm8, %v649_v59  ;;  %v683_v60 = vpop.permute.xlu1 %682 }
 0x198   : > { %693 = vst.msk [vmem:[#allocation2 + $0x20] sm:$0xff] %vm690_vm9, %v683_v60 }
 0x19a   : > { %v716_v61 = vpop.permute.xlu0 %715 }
 0x19b   : > { %726 = vst.msk [vmem:[#allocation2 + $0x20] sm:$0xff] %vm723_vm10, %v716_v61  ;;  %v519_v62 = vpop.permute.xlu1 %518 }
 0x19c   : > { %528 = vst.msk [vmem:[#allocation2 + $0x30] sm:$0xff] %vm524_vm4, %v519_v62 }
 0x19e   : > { %v552_v63 = vpop.permute.xlu0 %551 }
 0x19f   : > { %561 = vst.msk [vmem:[#allocation2 + $0x30] sm:$0xff] %vm557_vm5, %v552_v63  ;;  %v651_v0 = vpop.permute.xlu1 %650 }
 0x1a0   : > { %594 = vst.msk [vmem:[#allocation2 + $0x30] sm:$0xff] %vm590_vm6, %v585_v54 }
 0x1a1   : > { %627 = vst.msk [vmem:[#allocation2 + $0x30] sm:$0xff] %vm623_vm7, %v618_v53 }
 0x1a2   : > { %660 = vst.msk [vmem:[#allocation2 + $0x30] sm:$0xff] %vm656_vm8, %v651_v0  ;;  %v685_v1 = vpop.permute.xlu0 %684  ;;  %v748_v2 = vld [vmem:[#allocation2 + $0x20] sm:$0xff] }
 0x1a3   : > { %694 = vst.msk [vmem:[#allocation2 + $0x30] sm:$0xff] %vm690_vm9, %v685_v1  ;;  %v718_v3 = vpop.permute.xlu1 %717  ;;  %892 = vmatmul.mubr.bf16.gmra.mrb[8].mxu1 %v748_v2 }
 0x1a4   : > { %727 = vst.msk [vmem:[#allocation2 + $0x30] sm:$0xff] %vm723_vm10, %v718_v3  ;;  %1875 = vmatprep.mubr.msk.bf16.mxu1 %vm442_vm2, %v751_v4 }
 0x1ab   : > { %v750_v5 = vld [vmem:[#allocation2 + $0x30] sm:$0xff] }
 0x1ac   : > { %900 = vmatmul.mubr.bf16.gmra.mrb[12].mxu1 %v750_v5 }
 0x1ad   : > { %1939 = vmatprep.mubr.msk.f32.mxu1 %vm2108_vm13, %v2098_v8 }
 0x25c   : > { %v877_v13 = vpop.f32.mrb[0].mxu1 }
 0x25d   : > { %v878_v15 = vadd.f32 %v2437_v12, %v877_v13  ;;  %v879_v16 = vpop.f32.mrb[1].mxu1 }
 0x25e   : > { %v880_v17 = vpop.f32.mrb[2].mxu1 }
 0x25f   : > { %908 = vst.msk [vmem:[#allocation3 + $0x20] sm:$0xff] %vm442_vm2, %v878_v15  ;;  %v881_v18 = vadd.f32 %v2437_v12, %v880_v17  ;;  %v882_v19 = vpop.f32.mrb[3].mxu1 }
 0x261   : > { %909 = vst.msk [vmem:[#allocation3 + $0x38] sm:$0xff] %vm442_vm2, %v881_v18 }
 0x265   : > { %v885_v22 = vpop.f32.mrb[4].mxu1 }
 0x266   : > { %v886_v23 = vadd.f32 %v2437_v12, %v885_v22  ;;  %v887_v24 = vpop.f32.mrb[5].mxu1  ;;  %v965_v25 = vld [vmem:[#allocation3 + $0x21] sm:$0xff] }
 0x267   : > { %v933_v26 = vld [vmem:[#allocation3 + $0x20] sm:$0xff]  ;;  %v888_v33 = vpop.f32.mrb[6].mxu1  ;;  %v972_v34 = vpack.c.bf16 %v965_v25, %v2306_v32 }
 0x268   : > { %v996_v29 = vld [vmem:[#allocation3 + $0x1f] sm:$0xff]  ;;  %v940_v35 = vpack.c.bf16 %v933_v26, %v2299_v27  ;;  %910 = vst.msk [vmem:[#allocation3 + $0x50] sm:$0xff] %vm442_vm2, %v886_v23  ;;  %v889_v37 = vadd.f32 %v2437_v12, %v888_v33  ;;  %v890_v38 = vpop.f32.mrb[7].mxu1  ;;  %v997_v40 = vld [vmem:[#allocation3 + $0x37] sm:$0xff] }
 0x269   : > { %v924_v36 = vpack.c.bf16 %v996_v29, %v2301_v28  ;;  %v1029_v39 = vld [vmem:[#allocation3 + $0x38] sm:$0xff]  ;;  %980 = vrot.lane.b32.xlu1 %v972_v34, %s2102_s20  ;;  %v1004_v32 = vpack.c.bf16 %v997_v40, %v996_v29 }
 0x26a   : > { %948 = vrot.lane.b32.xlu0 %v940_v35, %s2100_s10  ;;  %v2032_v27 = vld [vmem:[%s2666_s5 + $0x38] sm:$0xff]   ;;  %911 = vst.msk [vmem:[#allocation3 + $0x68] sm:$0xff] %vm442_vm2, %v889_v37  ;;  %v1036_v28 = vpack.c.bf16 %v1029_v39, %v933_v26 }
 0x26b   : > { %928 = vst.msk [vmem:[#allocation2] sm:$0xff] %vm442_vm2, %v924_v36  ;;  %1286 = vmatpush1.bf16.msra.mxu0 %v2032_v27  ;;  %v1061_v41 = vld [vmem:[#allocation3 + $0x39] sm:$0xff] }
 0x26c   : > { %1287 = vmatprep.subr.bf16.mxu0 %v2099_v10  ;;  %v1068_v43 = vpack.c.bf16 %v1061_v41, %v965_v25 }
 0x26d   : > { %1044 = vrot.lane.b32.xlu1 %v1036_v28, %s2104_s22 }
 0x26e   : > { %1012 = vrot.lane.b32.xlu0 %v1004_v32, %s2101_s17 }
 0x26f   : > { %v1093_v44 = vld [vmem:[#allocation3 + $0x4f] sm:$0xff]  ;;  %1288 = vmatpush1.bf16.msra.mxu0 %v2033_v42 }
 0x270   : > { %v967_v45 = vld [vmem:[#allocation3 + $0x51] sm:$0xff]  ;;  %v1100_v46 = vpack.c.bf16 %v1093_v44, %v997_v40  ;;  %1952 = vmatprep.subr.mxu0 %v2098_v8 }
 0x271   : > { %v1125_v47 = vld [vmem:[#allocation3 + $0x50] sm:$0xff]  ;;  %v973_v48 = vpack.c.bf16 %v967_v45, %v1061_v41  ;;  %v999_v49 = vld [vmem:[#allocation3 + $0x67] sm:$0xff] }
 0x272   : > { %1076 = vrot.lane.b32.xlu0 %v1068_v43, %s2103_s21  ;;  %1108 = vrot.lane.b32.xlu1 %v1100_v46, %s2676_s12  ;;  %929 = vst.msk [vmem:[#allocation2 + $0x10] sm:$0xff] %vm442_vm2, %v1100_v46  ;;  %v1132_v10 = vpack.c.bf16 %v1125_v47, %v1029_v39  ;;  %v1005_v54 = vpack.c.bf16 %v999_v49, %v1093_v44  ;;  %v1031_v55 = vld [vmem:[#allocation3 + $0x68] sm:$0xff] }
 0x273   : > { %1168 = vst.msk [vmem:[#allocation2 + $0x8] sm:$0xff] %vm442_vm2, %v973_v48  ;;  %v1063_v59 = vld [vmem:[#allocation3 + $0x69] sm:$0xff]  ;;  %v1037_v60 = vpack.c.bf16 %v1031_v55, %v1125_v47 }
 0x274   : > { %v1069_v61 = vpack.c.bf16 %v1063_v59, %v967_v45 }
 0x276   : > { %1140 = vrot.lane.b32.xlu0 %v1132_v10, %s2677_s13  ;;  %v893_v50 = vpop.f32.mrb[8].mxu1  ;;  %950 = vrot.lane.b32.xlu1 %v1132_v10, %s2100_s10 }
 0x277   : > { %v894_v51 = vadd.f32 %v2437_v12, %v893_v50  ;;  %v895_v52 = vpop.f32.mrb[9].mxu1 }
 0x278   : > { %v896_v53 = vpop.f32.mrb[10].mxu1 }
 0x279   : > { %912 = vst.msk [vmem:[#allocation3 + $0x80] sm:$0xff] %vm442_vm2, %v894_v51  ;;  %v897_v56 = vadd.f32 %v2437_v12, %v896_v53  ;;  %v898_v57 = vpop.f32.mrb[11].mxu1 }
 0x27a   : > { %982 = vrot.lane.b32.xlu0 %v973_v48, %s2102_s20  ;;  %v1173_v58 = vld [vmem:[#allocation2 + $0x8] sm:$0xff]  ;;  %1014 = vrot.lane.b32.xlu1 %v1005_v54, %s2101_s17 }
 0x27b   : > { %1886 = vmatprep.mubr.msk.bf16.mxu0 %vm442_vm2, %v1173_v58  ;;  %913 = vst.msk [vmem:[#allocation3 + $0x98] sm:$0xff] %vm442_vm2, %v897_v56 }
 0x27e   : > { %1046 = vrot.lane.b32.xlu0 %v1037_v60, %s2104_s22  ;;  %1078 = vrot.lane.b32.xlu1 %v1069_v61, %s2103_s21 }
 0x27f   : > { %v901_v62 = vpop.f32.mrb[12].mxu1 }
 0x280   : > { %v902_v63 = vadd.f32 %v2437_v12, %v901_v62  ;;  %v903_v0 = vpop.f32.mrb[13].mxu1  ;;  %v1127_v1 = vld [vmem:[#allocation3 + $0x80] sm:$0xff] }
 0x281   : > { %v1095_v2 = vld [vmem:[#allocation3 + $0x7f] sm:$0xff]  ;;  %v904_v4 = vpop.f32.mrb[14].mxu1  ;;  %v1133_v5 = vpack.c.bf16 %v1127_v1, %v1031_v55 }
 0x282   : > { %v969_v3 = vld [vmem:[#allocation3 + $0x81] sm:$0xff]  ;;  %v1101_v6 = vpack.c.bf16 %v1095_v2, %v999_v49  ;;  %914 = vst.msk [vmem:[#allocation3 + $0xb0] sm:$0xff] %vm442_vm2, %v902_v63  ;;  %v905_v9 = vadd.f32 %v2437_v12, %v904_v4  ;;  %v906_v11 = vpop.f32.mrb[15].mxu1  ;;  %v1033_v13 = vld [vmem:[#allocation3 + $0x98] sm:$0xff]  ;;  %v2107_v4 = vmov -inf  }
 0x283   : > { %v974_v7 = vpack.c.bf16 %v969_v3, %v1063_v59  ;;  %1142 = vrot.lane.b32.xlu1 %v1133_v5, %s2677_s13  ;;  %v1001_v14 = vld [vmem:[#allocation3 + $0x97] sm:$0xff]  ;;  %v1038_v15 = vpack.c.bf16 %v1033_v13, %v1127_v1  ;;  %1337 = vst.msk [vmem:[#allocation4] sm:$0xff] %vm1336_vm11, %v2107_v4  ;;  %1338 = vst.msk [vmem:[#allocation4 + $0x8] sm:$0xff] %vm1336_vm11, %v2107_v4 }
 0x284   : > { %1110 = vrot.lane.b32.xlu0 %v1101_v6, %s2676_s12  ;;  %930 = vst.msk [vmem:[#allocation2 + $0x20] sm:$0xff] %vm442_vm2, %v1101_v6  ;;  %915 = vst.msk [vmem:[#allocation3 + $0xc8] sm:$0xff] %vm442_vm2, %v905_v9  ;;  %v1006_v16 = vpack.c.bf16 %v1001_v14, %v1095_v2  ;;  %v1065_v17 = vld [vmem:[#allocation3 + $0x99] sm:$0xff] }
 0x285   : > { %1169 = vst.msk [vmem:[#allocation2 + $0x18] sm:$0xff] %vm442_vm2, %v974_v7  ;;  %v1070_v23 = vpack.c.bf16 %v1065_v17, %v969_v3 }
 0x286   : > { %1346 = vst.msk [vmem:[#allocation4 + $0x1f] sm:$0x1] %vm1339_vm12, %v2107_v4  ;;  %1347 = vst.msk [vmem:[#allocation4 + $0x37] sm:$0x1] %vm1339_vm12, %v2107_v4 }
 0x287   : > { %984 = vrot.lane.b32.xlu1 %v974_v7, %s2102_s20  ;;  %1348 = vst.msk [vmem:[#allocation4 + $0x4f] sm:$0x1] %vm1339_vm12, %v2107_v4  ;;  %1349 = vst.msk [vmem:[#allocation4 + $0x67] sm:$0x1] %vm1339_vm12, %v2107_v4 }
 0x288   : > { %952 = vrot.lane.b32.xlu0 %v1133_v5, %s2100_s10  ;;  %1350 = vst.msk [vmem:[#allocation4 + $0x7f] sm:$0x1] %vm1339_vm12, %v2107_v4  ;;  %1351 = vst.msk [vmem:[#allocation4 + $0x97] sm:$0x1] %vm1339_vm12, %v2107_v4  ;;  %v2557_v5 = vld [vmem:[%s2667_s6] ss:$0 sm:$0xff] }
 0x289   : > { %v1097_v12 = vld [vmem:[#allocation3 + $0xaf] sm:$0xff]  ;;  %1352 = vst.msk [vmem:[#allocation4 + $0xaf] sm:$0x1] %vm1339_vm12, %v2107_v4  ;;  %1353 = vst.msk [vmem:[#allocation4 + $0xc7] sm:$0x1] %vm1339_vm12, %v2107_v4 }
 0x28a   : > { %v971_v18 = vld [vmem:[#allocation3 + $0xb1] sm:$0xff]  ;;  %v1102_v19 = vpack.c.bf16 %v1097_v12, %v1001_v14  ;;  %1345 = vst.msk [vmem:[#allocation4 + $0x7] sm:$0x1] %vm1339_vm12, %v2107_v4 }
 0x28b   : > { %v975_v20 = vpack.c.bf16 %v971_v18, %v1065_v17  ;;  %1048 = vrot.lane.b32.xlu1 %v1038_v15, %s2104_s22  ;;  %v1067_v22 = vld [vmem:[#allocation3 + $0xc9] sm:$0xff] }
 0x28c   : > { %1016 = vrot.lane.b32.xlu0 %v1006_v16, %s2101_s17  ;;  %931 = vst.msk [vmem:[#allocation2 + $0x30] sm:$0xff] %vm442_vm2, %v1102_v19  ;;  %v1167_v24 = vpack.c.bf16 %v1163_v21, %v1067_v22  ;;  %v939_v25 = vld [vmem:[#allocation3 + $0xb0] sm:$0xff]  ;;  %v1003_v29 = vld [vmem:[#allocation3 + $0xc7] sm:$0xff]  ;;  %v1071_v35 = vpack.c.bf16 %v1067_v22, %v971_v18  ;;  %v1175_v47 = vld [vmem:[#allocation2 + $0x18] sm:$0xff] }
 0x28d   : > { %1170 = vst.msk [vmem:[#allocation2 + $0x28] sm:$0xff] %vm442_vm2, %v975_v20  ;;  %v943_v26 = vpack.c.bf16 %v939_v25, %v1033_v13  ;;  %v1007_v33 = vpack.c.bf16 %v1003_v29, %v1097_v12  ;;  %v1035_v34 = vld [vmem:[#allocation3 + $0xc8] sm:$0xff]  ;;  %v1103_v38 = vpack.c.bf16 %v2377_v30, %v1003_v29  ;;  %v1375_v16 = vld [vmem:[#allocation4 + $0xf] sm:$0x1] }
 0x28e   : > { %1171 = vst.msk [vmem:[#allocation2 + $0x38] sm:$0xff] %vm442_vm2, %v1167_v24  ;;  %v1039_v36 = vpack.c.bf16 %v1035_v34, %v939_v25  ;;  %v1135_v37 = vpack.c.bf16 %v2380_v31, %v1035_v34 }
 0x28f   : > { %1112 = vrot.lane.b32.xlu1 %v1102_v19, %s2676_s12 }
 0x290   : > { %1080 = vrot.lane.b32.xlu0 %v1070_v23, %s2103_s21 }
 0x291   : > { %v1374_v15 = vld [vmem:[#allocation4 + $0x7] sm:$0xff] }
 0x293   : > { %954 = vrot.lane.b32.xlu1 %v943_v26, %s2100_s10 }
 0x294   : > { %1144 = vrot.lane.b32.xlu0 %v943_v26, %s2677_s13  ;;  %v1177_v54 = vld [vmem:[#allocation2 + $0x28] sm:$0xff] }
 0x295   : > { %v1179_v0 = vld [vmem:[#allocation2 + $0x38] sm:$0xff] }
 0x297   : > { %1018 = vrot.lane.b32.xlu1 %v1007_v33, %s2101_s17 }
 0x298   : > { %986 = vrot.lane.b32.xlu0 %v975_v20, %s2102_s20  ;;  %s1907_s20 = sshll.u32 %s2177_s9, 8  ;;  %s2109_s9 = smov [#allocation5]  }
 0x299   : > { %s2615_s26 = scalar_lea.hbm %s2669_s8, %s1907_s20  ;;  %s2038_s23 = sshll.u32 %s2109_s9, 4  ;;  %s2039_s23 = int_to_ptr.vmem [resolvable:$false] %s2038_s23 }
 0x29a   : > { %s2040_s24 = scalar_lea.vmem %s2039_s23, 512 }
 0x29b   : > { %1082 = vrot.lane.b32.xlu1 %v1071_v35, %s2103_s21 }
 0x29c   : > { %1050 = vrot.lane.b32.xlu0 %v1039_v36, %s2104_s22 }
 0x29f   : > { %1146 = vrot.lane.b32.xlu1 %v1135_v37, %s2677_s13 }
 0x2a0   : > { %1114 = vrot.lane.b32.xlu0 %v1103_v38, %s2676_s12  ;;  %s296_s12 = sand.u32 1, %s2088_s28  }
 0x2a1   : > { %s1847_s13 = sshll.u32 %s296_s12, 4  ;;  %s2618_s18 = scalar_lea.sflag [#allocation6], %s296_s12 }
 0x2a2   : > { %s298_s10 = scalar_lea.vmem [#allocation5], %s1847_s13 }
 0x2a3   : > { %s1781_s17 = sshll.u32 %s298_s10, 4  ;;  %s2610_s17 = int_to_ptr.vmem [resolvable:$true] %s1781_s17 }
 0x2a4   : > { %s2034_s19 = scalar_lea.vmem %s2610_s17, 256  ;;  %p2041_p0 = scmp.lt.s32.totalorder %s2610_s17, %s2039_s23 }
 0x2a5   : > { %p2035_p11 = scmp.ne.s32.totalorder %s2610_s17, %s2034_s19  ;;  %p2042_p1 = scmp.lt.s32.totalorder %s2040_s24, %s2034_s19 }
 0x2a7   : > { %p2036_p12 = pnand %p2035_p11, %p2194_p5  ;;  %p2043_p2 = por %p2042_p1, %p2041_p0 }
 0x2a9   : > { %p2037_p13 = pneg %p2036_p12 }
 0x2ab   : > { %p2044_p3 = pnand %p2043_p2, %p2037_p13 }
 0x2db   : > { %v981_v39 = vpop.permute.xlu1 %980 }
 0x2dc   : > { %v949_v40 = vpop.permute.xlu0 %948 }
 0x2dd   : > { %960 = vst.msk [vmem:[#allocation2] sm:$0xff] %vm524_vm4, %v949_v40 }
 0x2de   : > { %992 = vst.msk [vmem:[#allocation2] sm:$0xff] %vm557_vm5, %v981_v39 }
 0x2df   : > { %v1045_v27 = vpop.permute.xlu1 %1044 }
 0x2e0   : > { %v1013_v28 = vpop.permute.xlu0 %1012 }
 0x2e1   : > { %1024 = vst.msk [vmem:[#allocation2] sm:$0xff] %vm590_vm6, %v1013_v28 }
 0x2e2   : > { %1056 = vst.msk [vmem:[#allocation2] sm:$0xff] %vm623_vm7, %v1045_v27  ;;  %v1449_v27 = vld [vmem:[%s2668_s7] sm:$0xf] }
 0x2e4   : > { %v1077_v32 = vpop.permute.xlu0 %1076  ;;  %v1109_v30 = vpop.permute.xlu1 %1108 }
 0x2e5   : > { %1088 = vst.msk [vmem:[#allocation2] sm:$0xff] %vm656_vm8, %v1077_v32 }
 0x2e6   : > { %1120 = vst.msk [vmem:[#allocation2] sm:$0xff] %vm690_vm9, %v1109_v30 }
 0x2e8   : > { %v1141_v31 = vpop.permute.xlu0 %1140  ;;  %v951_v41 = vpop.permute.xlu1 %950 }
 0x2e9   : > { %1152 = vst.msk [vmem:[#allocation2] sm:$0xff] %vm723_vm10, %v1141_v31 }
 0x2ea   : > { %961 = vst.msk [vmem:[#allocation2 + $0x10] sm:$0xff] %vm524_vm4, %v951_v41 }
 0x2ec   : > { %v983_v42 = vpop.permute.xlu0 %982  ;;  %v1015_v43 = vpop.permute.xlu1 %1014 }
 0x2ed   : > { %993 = vst.msk [vmem:[#allocation2 + $0x10] sm:$0xff] %vm557_vm5, %v983_v42 }
 0x2ee   : > { %1025 = vst.msk [vmem:[#allocation2 + $0x10] sm:$0xff] %vm590_vm6, %v1015_v43 }
 0x2f0   : > { %v1047_v44 = vpop.permute.xlu0 %1046  ;;  %v1172_v45 = vld [vmem:[#allocation2] sm:$0xff]  ;;  %v1079_v46 = vpop.permute.xlu1 %1078 }
 0x2f1   : > { %1057 = vst.msk [vmem:[#allocation2 + $0x10] sm:$0xff] %vm623_vm7, %v1047_v44  ;;  %1304 = vmatmul.mubr.bf16.vlgmr.msra.gmra.mrb[8].mxu0 %v1172_v45 }
 0x2f2   : > { %1089 = vst.msk [vmem:[#allocation2 + $0x10] sm:$0xff] %vm656_vm8, %v1079_v46  ;;  %1887 = vmatprep.mubr.msk.bf16.mxu0 %vm442_vm2, %v1175_v47 }
 0x2f5   : > { %v1143_v48 = vpop.permute.xlu1 %1142 }
 0x2f6   : > { %v1111_v10 = vpop.permute.xlu0 %1110 }
 0x2f7   : > { %1121 = vst.msk [vmem:[#allocation2 + $0x10] sm:$0xff] %vm690_vm9, %v1111_v10 }
 0x2f8   : > { %1153 = vst.msk [vmem:[#allocation2 + $0x10] sm:$0xff] %vm723_vm10, %v1143_v48 }
 0x2f9   : > { %v985_v49 = vpop.permute.xlu1 %984 }
 0x2fa   : > { %v953_v50 = vpop.permute.xlu0 %952 }
 0x2fb   : > { %962 = vst.msk [vmem:[#allocation2 + $0x20] sm:$0xff] %vm524_vm4, %v953_v50 }
 0x2fc   : > { %994 = vst.msk [vmem:[#allocation2 + $0x20] sm:$0xff] %vm557_vm5, %v985_v49 }
 0x2fd   : > { %v1049_v51 = vpop.permute.xlu1 %1048 }
 0x2fe   : > { %v1017_v52 = vpop.permute.xlu0 %1016 }
 0x2ff   : > { %1026 = vst.msk [vmem:[#allocation2 + $0x20] sm:$0xff] %vm590_vm6, %v1017_v52  ;;  %v1174_v53 = vld [vmem:[#allocation2 + $0x10] sm:$0xff] }
 0x300   : > { %1058 = vst.msk [vmem:[#allocation2 + $0x20] sm:$0xff] %vm623_vm7, %v1049_v51  ;;  %1312 = vmatmul.mubr.bf16.gmra.mrb[12].mxu0 %v1174_v53 }
 0x301   : > { %1888 = vmatprep.mubr.msk.bf16.mxu0 %vm442_vm2, %v1177_v54  ;;  %v1113_v55 = vpop.permute.xlu1 %1112 }
 0x302   : > { %v1081_v56 = vpop.permute.xlu0 %1080 }
 0x303   : > { %1090 = vst.msk [vmem:[#allocation2 + $0x20] sm:$0xff] %vm656_vm8, %v1081_v56  ;;  %v1530_v56 = vld [vmem:[%s2668_s7] sm:$0xf] }
 0x304   : > { %1122 = vst.msk [vmem:[#allocation2 + $0x20] sm:$0xff] %vm690_vm9, %v1113_v55 }
 0x305   : > { %v955_v57 = vpop.permute.xlu1 %954 }
 0x306   : > { %v1145_v58 = vpop.permute.xlu0 %1144  ;;  %963 = vst.msk [vmem:[#allocation2 + $0x30] sm:$0xff] %vm524_vm4, %v955_v57 }
 0x307   : > { %1154 = vst.msk [vmem:[#allocation2 + $0x20] sm:$0xff] %vm723_vm10, %v1145_v58 }
 0x309   : > { %v1019_v59 = vpop.permute.xlu1 %1018 }
 0x30a   : > { %v987_v60 = vpop.permute.xlu0 %986 }
 0x30b   : > { %995 = vst.msk [vmem:[#allocation2 + $0x30] sm:$0xff] %vm557_vm5, %v987_v60 }
 0x30c   : > { %1027 = vst.msk [vmem:[#allocation2 + $0x30] sm:$0xff] %vm590_vm6, %v1019_v59 }
 0x30d   : > { %v1083_v61 = vpop.permute.xlu1 %1082 }
 0x30e   : > { %v1051_v62 = vpop.permute.xlu0 %1050  ;;  %v1176_v63 = vld [vmem:[#allocation2 + $0x20] sm:$0xff] }
 0x30f   : > { %1059 = vst.msk [vmem:[#allocation2 + $0x30] sm:$0xff] %vm623_vm7, %v1051_v62  ;;  %1320 = vmatmul.mubr.bf16.gmra.mrb[16].mxu0 %v1176_v63 }
 0x310   : > { %1091 = vst.msk [vmem:[#allocation2 + $0x30] sm:$0xff] %vm656_vm8, %v1083_v61  ;;  %1889 = vmatprep.mubr.msk.bf16.mxu0 %vm442_vm2, %v1179_v0 }
 0x311   : > { %v1147_v1 = vpop.permute.xlu1 %1146 }
 0x312   : > { %v1115_v2 = vpop.permute.xlu0 %1114 }
 0x313   : > { %1123 = vst.msk [vmem:[#allocation2 + $0x30] sm:$0xff] %vm690_vm9, %v1115_v2 }
 0x314   : > { %1155 = vst.msk [vmem:[#allocation2 + $0x30] sm:$0xff] %vm723_vm10, %v1147_v1 }
 0x31b   : > { %v1178_v3 = vld [vmem:[#allocation2 + $0x30] sm:$0xff] }
 0x31c   : > { %1328 = vmatmul.mubr.bf16.gmra.mrb[20].mxu0 %v1178_v3 }
 0x31d   : > { %1954 = vmatprep.mubr.msk.f32.mxu0 %vm2108_vm13, %v2098_v8 }
 0x3c4   : > { %v1305_v6 = vpop.f32.mrb[8].mxu0 }
 0x3c5   : > { %v1306_v7 = vadd.f32 %v2557_v5, %v1305_v6  ;;  %v1307_v9 = vpop.f32.mrb[9].mxu0 }
 0x3c6   : > { %v1308_v11 = vpop.f32.mrb[10].mxu0 }
 0x3c7   : > { %1366 = vst.msk [vmem:[#allocation4 + $0x20] sm:$0xff] %vm1336_vm11, %v1306_v7  ;;  %v1309_v13 = vadd.f32 %v2557_v5, %v1308_v11  ;;  %v1310_v14 = vpop.f32.mrb[11].mxu0 }
 0x3c9   : > { %1367 = vst.msk [vmem:[#allocation4 + $0x38] sm:$0xff] %vm1336_vm11, %v1309_v13 }
 0x3ce   : > { %v1376_v12 = vld [vmem:[#allocation4 + $0x1f] sm:$0xff]  ;;  %v1377_v17 = vld [vmem:[#allocation4 + $0x27] sm:$0x1] }
 0x3cf   : > { %v1392_v18 = vmax.f32 %v1374_v15, %v1376_v12  ;;  %v1393_v19 = vmax.f32 %v1375_v16, %v1377_v17  ;;  %v1609_v16 = vld [vmem:[%s2668_s7] sm:$0xf] }
 0x3d0   : > { %v1378_v20 = vld [vmem:[#allocation4 + $0x37] sm:$0xff]  ;;  %v1379_v21 = vld [vmem:[#allocation4 + $0x3f] sm:$0x1] }
 0x3d1   : > { %v1400_v22 = vmax.f32 %v1392_v18, %v1378_v20  ;;  %v1401_v23 = vmax.f32 %v1393_v19, %v1379_v21 }
 0x3d3   : > { %v1313_v24 = vpop.f32.mrb[12].mxu0  ;;  %v1412_v25 = vrot.slane %v1400_v22, 1  ;;  %v1429_v26 = vrot.slane %v1400_v22, 2  ;;  %v1430_v29 = vrot.slane %v1401_v23, 2 }
 0x3d4   : > { %v1314_v33 = vadd.f32 %v2557_v5, %v1313_v24  ;;  %v1315_v34 = vpop.f32.mrb[13].mxu0 }
 0x3d5   : > { %v1316_v35 = vpop.f32.mrb[14].mxu0  ;;  %v1420_v36 = vmax.f32 %v1400_v22, %v1412_v25  ;;  %v1431_v37 = vsel %vm1428_vm14, %v1429_v26, %v1430_v29  ;;  %v1688_v34 = vld [vmem:[%s2668_s7] sm:$0xf] }
 0x3d6   : > { %1368 = vst.msk [vmem:[#allocation4 + $0x50] sm:$0xff] %vm1336_vm11, %v1314_v33  ;;  %v1317_v38 = vadd.f32 %v2557_v5, %v1316_v35  ;;  %v1318_v39 = vpop.f32.mrb[15].mxu0 }
 0x3d7   : > { %v1445_v40 = vmax.f32 %v1420_v36, %v1431_v37 }
 0x3d8   : > { %1369 = vst.msk [vmem:[#allocation4 + $0x68] sm:$0xff] %vm1336_vm11, %v1317_v38 }
 0x3d9   : > { %1938 = vmatpush3.msk.msra.mxu1 %vm1454_vm15, %v1445_v40 }
 0x3da   : > { %1942 = vmatprep.subr.mxu1 %v2098_v8  ;;  %1940 = vmatmul.mubr.msk.f32.vlgmr.msra.gmra.mrb[16].mxu1 %vm1450_vm0, %v1449_v27 }
 0x3db   : > { %1944 = vmatprep.mubr.msk.f32.mxu1 %vm2108_vm13, %v2098_v8 }
 0x3dd   : > { %v1380_v28 = vld [vmem:[#allocation4 + $0x4f] sm:$0xff]  ;;  %v1381_v32 = vld [vmem:[#allocation4 + $0x57] sm:$0x1] }
 0x3de   : > { %v1394_v30 = vmax.f32 %v1378_v20, %v1380_v28  ;;  %v1395_v31 = vmax.f32 %v1379_v21, %v1381_v32 }
 0x3df   : > { %v1382_v41 = vld [vmem:[#allocation4 + $0x67] sm:$0xff]  ;;  %v1383_v42 = vld [vmem:[#allocation4 + $0x6f] sm:$0x1] }
 0x3e0   : > { %v1402_v43 = vmax.f32 %v1394_v30, %v1382_v41  ;;  %v1403_v44 = vmax.f32 %v1395_v31, %v1383_v42 }
 0x3e2   : > { %v1321_v45 = vpop.f32.mrb[16].mxu0  ;;  %v1413_v46 = vrot.slane %v1402_v43, 1  ;;  %v1432_v47 = vrot.slane %v1402_v43, 2  ;;  %v1433_v48 = vrot.slane %v1403_v44, 2 }
 0x3e3   : > { %v1322_v10 = vadd.f32 %v2557_v5, %v1321_v45  ;;  %v1323_v49 = vpop.f32.mrb[17].mxu0 }
 0x3e4   : > { %v1324_v50 = vpop.f32.mrb[18].mxu0  ;;  %v1421_v51 = vmax.f32 %v1402_v43, %v1413_v46  ;;  %v1434_v52 = vsel %vm1428_vm14, %v1432_v47, %v1433_v48 }
 0x3e5   : > { %1370 = vst.msk [vmem:[#allocation4 + $0x80] sm:$0xff] %vm1336_vm11, %v1322_v10  ;;  %v1325_v53 = vadd.f32 %v2557_v5, %v1324_v50  ;;  %v1326_v54 = vpop.f32.mrb[19].mxu0 }
 0x3e6   : > { %v1446_v55 = vmax.f32 %v1421_v51, %v1434_v52 }
 0x3e7   : > { %1371 = vst.msk [vmem:[#allocation4 + $0x98] sm:$0xff] %vm1336_vm11, %v1325_v53 }
 0x3e8   : > { %1943 = vmatpush3.msk.msra.mxu1 %vm1454_vm15, %v1446_v55 }
 0x3e9   : > { %1947 = vmatprep.subr.mxu1 %v2098_v8  ;;  %1945 = vmatmul.mubr.msk.f32.vlgmr.msra.gmra.mrb[18].mxu1 %vm1450_vm0, %v1530_v56 }
 0x3ea   : > { %1949 = vmatprep.mubr.msk.f32.mxu1 %vm2108_vm13, %v2098_v8 }
 0x3ec   : > { %v1384_v57 = vld [vmem:[#allocation4 + $0x7f] sm:$0xff]  ;;  %v1385_v58 = vld [vmem:[#allocation4 + $0x87] sm:$0x1] }
 0x3ed   : > { %v1396_v59 = vmax.f32 %v1382_v41, %v1384_v57  ;;  %v1397_v60 = vmax.f32 %v1383_v42, %v1385_v58 }
 0x3ee   : > { %v1386_v61 = vld [vmem:[#allocation4 + $0x97] sm:$0xff]  ;;  %v1387_v62 = vld [vmem:[#allocation4 + $0x9f] sm:$0x1] }
 0x3ef   : > { %v1329_v63 = vpop.f32.mrb[20].mxu0  ;;  %v1404_v0 = vmax.f32 %v1396_v59, %v1386_v61  ;;  %v1405_v1 = vmax.f32 %v1397_v60, %v1387_v62 }
 0x3f0   : > { %v1330_v2 = vadd.f32 %v2557_v5, %v1329_v63  ;;  %v1331_v3 = vpop.f32.mrb[21].mxu0 }
 0x3f1   : > { %v1332_v4 = vpop.f32.mrb[22].mxu0  ;;  %v1414_v6 = vrot.slane %v1404_v0, 1  ;;  %v1435_v7 = vrot.slane %v1404_v0, 2  ;;  %v1436_v9 = vrot.slane %v1405_v1, 2 }
 0x3f2   : > { %1372 = vst.msk [vmem:[#allocation4 + $0xb0] sm:$0xff] %vm1336_vm11, %v1330_v2  ;;  %v1333_v8 = vadd.f32 %v2557_v5, %v1332_v4  ;;  %v1334_v11 = vpop.f32.mrb[23].mxu0 }
 0x3f3   : > { %v1422_v13 = vmax.f32 %v1404_v0, %v1414_v6  ;;  %v1437_v14 = vsel %vm1428_vm14, %v1435_v7, %v1436_v9 }
 0x3f4   : > { %1373 = vst.msk [vmem:[#allocation4 + $0xc8] sm:$0xff] %vm1336_vm11, %v1333_v8 }
 0x3f5   : > { %v1447_v15 = vmax.f32 %v1422_v13, %v1437_v14 }
 0x3f7   : > { %1948 = vmatpush3.msk.msra.mxu1 %vm1454_vm15, %v1447_v15 }
 0x3f8   : > { %1950 = vmatmul.mubr.msk.f32.vlgmr.msra.gmra.mrb[20].mxu1 %vm1450_vm0, %v1609_v16 }
 0x3f9   : > { %v1388_v12 = vld [vmem:[#allocation4 + $0xaf] sm:$0xff]  ;;  %v1389_v17 = vld [vmem:[#allocation4 + $0xb7] sm:$0x1] }
 0x3fa   : > { %v1398_v18 = vmax.f32 %v1386_v61, %v1388_v12  ;;  %v1399_v5 = vmax.f32 %v1387_v62, %v1389_v17 }
 0x3fb   : > { %v1390_v19 = vld [vmem:[#allocation4 + $0xc7] sm:$0xff]  ;;  %v1391_v20 = vld [vmem:[#allocation4 + $0xcf] sm:$0x1] }
 0x3fc   : > { %v1406_v21 = vmax.f32 %v1398_v18, %v1390_v19  ;;  %v1407_v22 = vmax.f32 %v1399_v5, %v1391_v20 }
 0x3fe   : > { %v1415_v23 = vrot.slane %v1406_v21, 1  ;;  %v1438_v24 = vrot.slane %v1406_v21, 2  ;;  %v1439_v25 = vrot.slane %v1407_v22, 2 }
 0x400   : > { %v1423_v26 = vmax.f32 %v1406_v21, %v1415_v23  ;;  %v1440_v29 = vsel %vm1428_vm14, %v1438_v24, %v1439_v25 }
 0x402   : > { %v1448_v33 = vmax.f32 %v1423_v26, %v1440_v29 }
 0x404   : > { %1953 = vmatpush3.msk.msra.mxu0 %vm1454_vm15, %v1448_v33 }
 0x405   : > { %1955 = vmatmul.mubr.msk.f32.vlgmr.msra.gmra.mrb[24].mxu0 %vm1450_vm0, %v1688_v34 }
 0x4ad   : > { %v1524_v35 = vpop.f32.mrb[16].mxu1 }
 0x4ae   : > { %1529 = vst.msk [vmem:[%s298_s10] sm:$0xf] %vm1528_vm1, %v1524_v35  ;;  %v1941_v36 = vpop.f32.mrb[17].mxu1 }
 0x4bc   : > { %v1603_v37 = vpop.f32.mrb[18].mxu1 }
 0x4bd   : > { %1894 = vst.msk [vmem:[%s298_s10 + $0x4] sm:$0xf] %vm1528_vm1, %v1603_v37  ;;  %v1946_v38 = vpop.f32.mrb[19].mxu1 }
 0x4cb   : > { %v1682_v39 = vpop.f32.mrb[20].mxu1 }
 0x4cc   : > { %1897 = vst.msk [vmem:[%s298_s10 + $0x8] sm:$0xf] %vm1528_vm1, %v1682_v39  ;;  %v1951_v40 = vpop.f32.mrb[21].mxu1 }
 0x4d8   : > { %v1761_v27 = vpop.f32.mrb[24].mxu0 }
 0x4d9   : > { %1900 = vst.msk [vmem:[%s298_s10 + $0xc] sm:$0xf] %vm1528_vm1, %v1761_v27  ;;  %v1956_v28 = vpop.f32.mrb[25].mxu0 }
 0x4da   : > { %2047 = shalt.err (!%p2044_p3)
}
 0x4db   : > { %s2048_s12 = scalar_lea.hbm %s2615_s26, 256  ;;  %s2052_s20 = scalar_lea.hbm %s2669_s8, 512 }
 0x4dc   : > { %p2049_p4 = scmp.ne.s32.totalorder %s2615_s26, %s2048_s12  ;;  %p2053_p9 = scmp.lt.u32.totalorder %s2615_s26, %s2669_s8 }
 0x4dd   : > { %p2054_p10 = scmp.lt.u32.totalorder %s2052_s20, %s2048_s12  ;;  %p2056_p12 = scmp.lt.u32.totalorder %s2048_s12, %s2615_s26 }
 0x4de   : > { %p2050_p7 = pnand %p2049_p4, %p2194_p5 }
 0x4df   : > { %p2055_p11 = por %p2054_p10, %p2053_p9 }
 0x4e0   : > { %p2051_p8 = pneg %p2050_p7 }
 0x4e1   : > { %p2057_p13 = por %p2056_p12, %p2055_p11 }
 0x4e3   : > { %p2058_p0 = pnand %p2057_p13, %p2051_p8 }
 0x4e5   : > { %2061 = shalt.err (!%p2058_p0)
}
 0x4e6   : > { %s2110_s19 = smov 4  }
 0x4e7   : > { %1958 = dma.vmem_to_hbm [thread:$0]  (%p2194_p5), %s2610_s17, 256, %s2615_s26, %s2618_s18, %s2104_s22, %s2104_s22, %s2110_s19  }
 0x4e8 PF: > { %p1964_p1 = scmp.ge.s32.totalorder %s2096_s30, 2  ;;  %s1796_s9 = sand.u32 1, %s2084_s27  }
 0x4e9   : > { %s1797_s23 = scalar_lea.sflag [#allocation6], %s1796_s9 }
 0x4ea   : > { %p1961_p2 = pnand %p1964_p1, %p2198_p6 }
 0x4ec   : > { %2079 = dma.done.wait (!%p1961_p2), %s1797_s23, 256  }
 0x4ed   : > { %2081 = vsyncadd (!%p1961_p2), %s1797_s23, 4294967040  ;;  %p18_p3 = scmp.ge.s32.totalorder %s2181_s11, 4   ;;  %s2678_s27 = smov %s2088_s28 }
 0x4ee   : > { %s2679_s28 = smov %s2092_s29  ;;  %s2680_s29 = smov %s2192_s14 }
 0x4ef   : > { %s2681_s30 = smov %s2181_s11  ;;  %20 = sbr.rel (!%p18_p3) target bundleno = 3 (0x3), region = 95 }
 0x4f6   :  { %1802 = vsyncpa [#allocation6], 1 }
 0x4f7   :  { %1804 = vsyncpa [#allocation6 + $0x1], 1 }

</bundles_post_ra>
